<compile_context>
chip_gen: v5e
topology: v5e:2x2
jax: 0.10.0
libtpu: 0.0.40
codegen_flags: <defaults>
</compile_context>

<pallas_src>
import functools

import jax
import jax.numpy as jnp
import numpy as np
from jax.experimental import pallas as pl
from jax.experimental.pallas import tpu as pltpu


# ----------------------------------------------------------------------------
# Fused kernel: kNN selection + one-hot gather + EdgeConv (3x3 conv over the
# (N, K) neighbour image + folded bias/BN + ReLU + max over K), per batch elem.
# Layout: channels on sublanes, pixels (N = H*W) on lanes.
# ----------------------------------------------------------------------------
def _dy_graph_conv_kernel(x_ref, yg_ref, yn_ref, wc_ref, wd_ref, shift_ref, o_ref,
                          *, kernel_size, dilation):
    # x_ref    : (1, C, N)        raw centre features (native NCHW flattened)
    # yg_ref   : (1, C, T)        raw candidate features (used by the gather)
    # yn_ref   : (1, T, C)        L2-normalized candidates, channels-last (kNN scoring)
    # wc_ref   : (3*Cout, 3*C)    BN-scaled conv weights, centre-feature half   (bf16)
    # wd_ref   : (3*Cout, 3*C)    BN-scaled conv weights, diff-feature half     (bf16)
    #                             row = kernel_column*Cout + cout, col = kernel_row*C + cin
    # shift_ref: (Cout, 1)        folded conv bias + BN shift
    # o_ref    : (1, Cout, N)
    C, N = x_ref.shape[1], x_ref.shape[2]
    T = yg_ref.shape[2]
    Cout = o_ref.shape[1]
    K = kernel_size

    xT = x_ref[0]          # (C, N) f32
    yT = yg_ref[0]         # (C, T) f32
    ync = yn_ref[0]        # (T, C) f32, already normalized
    sh = shift_ref[...]    # (Cout, 1)
    wd = wd_ref[...]       # (3*Cout, 3*C) bf16

    # ---- kNN scores: cosine similarity; dist = 2 - 2*sim for unit rows --------------------
    # TODO(synk): rows with norm < eps degenerate to sim == 0; the reference's full
    #             three-term distance ranks such (never-occurring here) rows differently.
    eps2 = jnp.float32(1e-24)
    xn = xT * jax.lax.rsqrt(jnp.maximum(jnp.sum(xT * xT, axis=0, keepdims=True), eps2))
    scores = jax.lax.dot_general(ync, xn, (((1,), (0,)), ((), ())),
                                 preferred_element_type=jnp.float32)          # (T, N) f32

    # ---- hoisted helpers --------------------------------------------------------------------
    zc = jnp.zeros((C, 1), jnp.float32)
    shift_r = lambda a: jnp.concatenate([zc, a[:, :N - 1]], axis=1)  # out[:, n] = a[:, n-1]
    shift_l = lambda a: jnp.concatenate([a[:, 1:], zc], axis=1)      # out[:, n] = a[:, n+1]
    t_iota = jax.lax.broadcasted_iota(jnp.int32, (T, N), 0).astype(jnp.float32)
    neg = jnp.float32(-1e30)
    t_f = jnp.float32(T)

    # ---- centre-feature conv taps: independent of the neighbour column, computed once ------
    xi3 = jnp.concatenate([shift_r(xT), xT, shift_l(xT)], axis=0)             # (3C, N)
    cc = jax.lax.dot_general(wc_ref[...], xi3.astype(wc_ref.dtype),
                             (((1,), (0,)), ((), ())),
                             preferred_element_type=jnp.float32)              # (3*Cout, N)
    cc0, cc1, cc2 = cc[:Cout], cc[Cout:2 * Cout], cc[2 * Cout:]               # sublane views
    base_mid = cc0 + cc1 + cc2 + sh
    base_first = cc1 + cc2 + sh
    base_last = cc0 + cc1 + sh

    def col_base(j):   # K-direction zero padding of the centre contribution for column j
        if K == 1:
            return cc1 + sh
        if j == 0:
            return base_first
        if j == K - 1:
            return base_last
        return base_mid

    # ---- streaming loop over neighbour columns (Python-unrolled) ---------------------------
    chosen = jnp.zeros((T, N), jnp.float32)          # 0/1 mask of already-selected neighbours
    res = jnp.zeros((Cout, N), jnp.float32)          # running max; 0-init == the final ReLU
    pend_prev = None                                 # partial sum for column j-1
    pend_curr = col_base(0)                          # partial sum for column j
    j = 0
    for step in range(kernel_size * dilation):
        # -- one masked-argmax pass: nearest not-yet-selected candidate (ascending distance) --
        masked = jnp.where(chosen > 0.0, neg, scores)
        m = jnp.max(masked, axis=0, keepdims=True)                            # (1, N)
        cand = jnp.where(masked == m, t_iota, t_f)
        first = jnp.min(cand, axis=0, keepdims=True)                          # lowest-index tie break
        onehot = (t_iota == first).astype(jnp.float32)                        # (T, N)
        chosen = chosen + onehot
        if step % dilation != 0:
            continue   # DenseDilated keeps every `dilation`-th neighbour

        # -- fused gather via one-hot matmul (exact), diff features ---------------------------
        xj = jax.lax.dot_general(yT, onehot, (((1,), (0,)), ((), ())),
                                 preferred_element_type=jnp.float32)          # (C, N)
        d = xj - xT

        # -- all three kernel-row taps in ONE matmul (3C-deep contraction, bf16 operands) -----
        d3 = jnp.concatenate([shift_r(d), d, shift_l(d)], axis=0)             # (3C, N)
        g = jax.lax.dot_general(wd, d3.astype(wd.dtype),
                                (((1,), (0,)), ((), ())),
                                preferred_element_type=jnp.float32)           # (3*Cout, N)
        h0, h1, h2 = g[:Cout], g[Cout:2 * Cout], g[2 * Cout:]                 # sublane views

        # -- streaming K-direction combine + ReLU + max over neighbour columns ----------------
        if pend_prev is not None:
            res = jnp.maximum(res, pend_prev + h2)    # finalize column j-1
        pend_prev = pend_curr + h1
        pend_curr = col_base(j + 1) + h0 if j + 1 < K else None
        j += 1

    res = jnp.maximum(res, pend_prev)                 # finalize last column (no right tap)
    o_ref[0] = res


# ----------------------------------------------------------------------------
# Full DyGraphConv2d forward.
# ----------------------------------------------------------------------------
def dy_graph_conv2d(x, y, params, kernel_size=9, dilation=1):
    conv_w, conv_b, gamma, beta, run_mean, run_var = params
    B, C, H, W = x.shape
    T = y.shape[2]
    N = H * W
    Cout = conv_w.shape[0]
    assert kernel_size * dilation <= T

    x_cn = x.reshape(B, C, N)                                    # native layout, free reshape

    # L2-normalize y along channels (kNN scoring only); tiny (B, T, C) side input.
    yn = y * jax.lax.rsqrt(jnp.maximum(jnp.sum(y * y, axis=1, keepdims=True), 1e-24))
    yn_cl = jnp.transpose(yn, (0, 2, 1))                         # (B, T, C)

    # Fold conv bias + inference BatchNorm into per-channel scale/shift and split the conv
    # weight into its centre-feature (x_i) and diff-feature (x_j - x_i) halves, laid out as
    # (kernel_column*Cout + cout, kernel_row*C + cin) slabs.
    scale = gamma * jax.lax.rsqrt(run_var + 1e-5)
    shift = ((conv_b - run_mean) * scale + beta).reshape(Cout, 1).astype(jnp.float32)
    w_s = conv_w * scale[:, None, None, None]                    # (Cout, 2C, 3, 3)
    to_slab = lambda w: jnp.transpose(w, (3, 0, 2, 1)).reshape(3 * Cout, 3 * C)
    wc = to_slab(w_s[:, :C]).astype(jnp.bfloat16)                # centre-feature weights
    wd = to_slab(w_s[:, C:]).astype(jnp.bfloat16)                # diff-feature weights

    kernel = functools.partial(_dy_graph_conv_kernel,
                               kernel_size=kernel_size, dilation=dilation)
    out = pl.pallas_call(
        kernel,
        out_shape=jax.ShapeDtypeStruct((B, Cout, N), jnp.float32),
        grid_spec=pltpu.PrefetchScalarGridSpec(
            num_scalar_prefetch=0,
            grid=(B,),
            in_specs=[
                pl.BlockSpec((1, C, N), lambda b: (b, 0, 0)),
                pl.BlockSpec((1, C, T), lambda b: (b, 0, 0)),
                pl.BlockSpec((1, T, C), lambda b: (b, 0, 0)),
                pl.BlockSpec((3 * Cout, 3 * C), lambda b: (0, 0)),
                pl.BlockSpec((3 * Cout, 3 * C), lambda b: (0, 0)),
                pl.BlockSpec((Cout, 1), lambda b: (0, 0)),
            ],
            out_specs=pl.BlockSpec((1, Cout, N), lambda b: (b, 0, 0)),
        ),
        compiler_params=pltpu.CompilerParams(dimension_semantics=("parallel",)),
    )(x_cn, y, yn_cl, wc, wd, shift)
    return out.reshape(B, Cout, H, W)                            # free reshape, no transpose


# ----------------------------------------------------------------------------
# Pure-JAX reference (for verification), faithful to the PyTorch module.
# ----------------------------------------------------------------------------
def reference_forward(x, y, params, kernel_size, dilation):
    conv_w, conv_b, gamma, beta, run_mean, run_var = params
    B, C, H, W = x.shape
    N = H * W
    hp = jax.lax.Precision.HIGHEST
    eps = 1e-12

    x_cl = jnp.transpose(x.reshape(B, C, N), (0, 2, 1))
    y_cl = jnp.transpose(y, (0, 2, 1))
    xn = x_cl / jnp.maximum(jnp.sqrt(jnp.sum(x_cl * x_cl, -1, keepdims=True)), eps)
    yn = y_cl / jnp.maximum(jnp.sqrt(jnp.sum(y_cl * y_cl, -1, keepdims=True)), eps)
    inner = -2.0 * jnp.einsum("bnc,btc->bnt", xn, yn, precision=hp)
    dist = jnp.sum(xn * xn, -1, keepdims=True) + inner + jnp.sum(yn * yn, -1)[:, None, :]
    nn_idx = jax.lax.top_k(-dist, kernel_size * dilation)[1][:, :, ::dilation]

    xj = jax.vmap(lambda feats, idx: feats[idx])(y_cl, nn_idx)   # (B, N, K, C)
    xi = jnp.broadcast_to(x_cl[:, :, None, :], xj.shape)
    f = jnp.concatenate([xi, xj - xi], axis=-1)                  # (B, N, K, 2C)

    w_hwio = jnp.transpose(conv_w, (2, 3, 1, 0))
    conv = jax.lax.conv_general_dilated(
        f, w_hwio, window_strides=(1, 1), padding="SAME",
        dimension_numbers=("NHWC", "HWIO", "NHWC"), precision=hp,
    ) + conv_b
    bn = (conv - run_mean) * jax.lax.rsqrt(run_var + 1e-5) * gamma + beta
    out = jnp.max(jnp.maximum(bn, 0.0), axis=2)                  # (B, N, Cout)
    return jnp.transpose(out, (0, 2, 1)).reshape(B, -1, H, W)


# ----------------------------------------------------------------------------
if __name__ == "__main__":
    key = jax.random.PRNGKey(0)
    B, C, H, W, T = 2, 8, 8, 8, 16
    Cout = 16
    kernel_size, dilation = 9, 1  # k * d must be <= T

    k1, k2, k3, k4, k5, k6, k7, k8 = jax.random.split(key, 8)
    x = jax.random.normal(k1, (B, C, H, W), jnp.float32)
    y = jax.random.normal(k2, (B, C, T), jnp.float32)

    # Deterministic parameters (Conv2d(2C -> Cout, 3x3) + BatchNorm2d(Cout), inference stats).
    conv_w = jax.random.normal(k3, (Cout, 2 * C, 3, 3), jnp.float32) * (2.0 / (2 * C * 9)) ** 0.5
    conv_b = 0.05 * jax.random.normal(k4, (Cout,), jnp.float32)
    gamma = 1.0 + 0.1 * jax.random.normal(k5, (Cout,), jnp.float32)
    beta = 0.1 * jax.random.normal(k6, (Cout,), jnp.float32)
    run_mean = 0.1 * jax.random.normal(k7, (Cout,), jnp.float32)
    run_var = 0.5 + jax.random.uniform(k8, (Cout,), jnp.float32)
    params = (conv_w, conv_b, gamma, beta, run_mean, run_var)

    fwd = jax.jit(functools.partial(dy_graph_conv2d, params=params,
                                    kernel_size=kernel_size, dilation=dilation))
    out = jax.block_until_ready(fwd(x, y))

    ref = reference_forward(x, y, params, kernel_size, dilation)
    # Tolerance covers the bf16 conv-matmul operands; kNN scoring / gather remain exact f32.
    np.testing.assert_allclose(np.asarray(out), np.asarray(ref), rtol=5e-2, atol=5e-2)
    assert out.shape == (B, Cout, H, W)
    print("KERNEL_OK")
</pallas_src>

<mosaic_0001>
module attributes {stable_mosaic.version = 11 : i64} {
  func.func @_dy_graph_conv_kernel(%arg0: i32, %arg1: memref<1x8x64xf32, #tpu.memory_space<vmem>>, %arg2: memref<1x8x16xf32, #tpu.memory_space<vmem>>, %arg3: memref<1x16x8xf32, #tpu.memory_space<vmem>>, %arg4: memref<48x24xbf16, #tpu.memory_space<vmem>>, %arg5: memref<48x24xbf16, #tpu.memory_space<vmem>>, %arg6: memref<16x1xf32, #tpu.memory_space<vmem>>, %arg7: memref<1x16x64xf32, #tpu.memory_space<vmem>>) attributes {dimension_semantics = [#tpu.dimension_semantics<parallel>], iteration_bounds = array<i64: 2>, scalar_prefetch = 0 : i64, scratch_operands = 0 : i64, tpu.core_type = #tpu.core_type<tc>, window_params = [{transform_indices = @transform_0, window_bounds = array<i64: 1, 8, 64>}, {transform_indices = @transform_1, window_bounds = array<i64: 1, 8, 16>}, {transform_indices = @transform_2, window_bounds = array<i64: 1, 16, 8>}, {pipeline_mode = #tpu.pipeline_mode<synchronous>, transform_indices = @transform_3, window_bounds = array<i64: 48, 24>}, {pipeline_mode = #tpu.pipeline_mode<synchronous>, transform_indices = @transform_4, window_bounds = array<i64: 48, 24>}, {pipeline_mode = #tpu.pipeline_mode<synchronous>, transform_indices = @transform_5, window_bounds = array<i64: 16, 1>}, {transform_indices = @transform_6, window_bounds = array<i64: 1, 16, 64>}]} {
    %c0 = arith.constant 0 : index
    %c0_0 = arith.constant 0 : index
    %c0_1 = arith.constant 0 : index
    %0 = vector.load %arg1[%c0, %c0_0, %c0_1] : memref<1x8x64xf32, #tpu.memory_space<vmem>>, vector<1x8x64xf32>
    %1 = vector.shape_cast %0 : vector<1x8x64xf32> to vector<8x64xf32>
    %c0_2 = arith.constant 0 : index
    %c0_3 = arith.constant 0 : index
    %c0_4 = arith.constant 0 : index
    %2 = vector.load %arg2[%c0_2, %c0_3, %c0_4] : memref<1x8x16xf32, #tpu.memory_space<vmem>>, vector<1x8x16xf32>
    %3 = vector.shape_cast %2 : vector<1x8x16xf32> to vector<8x16xf32>
    %c0_5 = arith.constant 0 : index
    %c0_6 = arith.constant 0 : index
    %c0_7 = arith.constant 0 : index
    %4 = vector.load %arg3[%c0_5, %c0_6, %c0_7] : memref<1x16x8xf32, #tpu.memory_space<vmem>>, vector<1x16x8xf32>
    %5 = vector.shape_cast %4 : vector<1x16x8xf32> to vector<16x8xf32>
    %c0_8 = arith.constant 0 : index
    %c0_9 = arith.constant 0 : index
    %6 = vector.load %arg6[%c0_8, %c0_9] : memref<16x1xf32, #tpu.memory_space<vmem>>, vector<16x1xf32>
    %c0_10 = arith.constant 0 : index
    %c0_11 = arith.constant 0 : index
    %7 = vector.load %arg5[%c0_10, %c0_11] : memref<48x24xbf16, #tpu.memory_space<vmem>>, vector<48x24xbf16>
    %8 = arith.mulf %1, %1 : vector<8x64xf32>
    %cst = arith.constant dense<0.000000e+00> : vector<64xf32>
    %9 = vector.multi_reduction <add>, %8, %cst [0] : vector<8x64xf32> to vector<64xf32>
    %10 = vector.shape_cast %9 : vector<64xf32> to vector<1x64xf32>
    %cst_12 = arith.constant 1.000000e-24 : f32
    %11 = vector.broadcast %cst_12 : f32 to vector<1x64xf32>
    %12 = arith.maximumf %10, %11 : vector<1x64xf32>
    %13 = math.rsqrt %12 : vector<1x64xf32>
    %14 = vector.broadcast %13 : vector<1x64xf32> to vector<8x64xf32>
    %15 = arith.mulf %1, %14 : vector<8x64xf32>
    %cst_13 = arith.constant dense<0.000000e+00> : vector<16x64xf32>
    %16 = tpu.matmul %5, %15, %cst_13 {dimension_numbers = #tpu.dot_dimension_numbers<[1], [0], [0], [1], [0, 0, 1, 1], [], []>} : vector<16x8xf32>, vector<8x64xf32>, vector<16x64xf32> -> vector<16x64xf32>
    %cst_14 = arith.constant 0.000000e+00 : f32
    %17 = vector.broadcast %cst_14 : f32 to vector<8x1xf32>
    %18 = tpu.iota {dimensions = array<i32: 0>} : vector<16x64xi32>
    %19 = arith.sitofp %18 : vector<16x64xi32> to vector<16x64xf32>
    %20 = vector.extract_strided_slice %1 {offsets = [0, 0], sizes = [8, 63], strides = [1, 1]} : vector<8x64xf32> to vector<8x63xf32>
    %21 = tpu.concatenate %17, %20 in 1 : vector<8x1xf32>, vector<8x63xf32> -> vector<8x64xf32>
    %22 = vector.extract_strided_slice %1 {offsets = [0, 1], sizes = [8, 63], strides = [1, 1]} : vector<8x64xf32> to vector<8x63xf32>
    %23 = tpu.concatenate %22, %17 in 1 : vector<8x63xf32>, vector<8x1xf32> -> vector<8x64xf32>
    %24 = tpu.concatenate %21, %1, %23 in 0 : vector<8x64xf32>, vector<8x64xf32>, vector<8x64xf32> -> vector<24x64xf32>
    %c0_15 = arith.constant 0 : index
    %c0_16 = arith.constant 0 : index
    %25 = vector.load %arg4[%c0_15, %c0_16] : memref<48x24xbf16, #tpu.memory_space<vmem>>, vector<48x24xbf16>
    %26 = arith.truncf %24 : vector<24x64xf32> to vector<24x64xbf16>
    %cst_17 = arith.constant dense<0.000000e+00> : vector<48x64xf32>
    %27 = tpu.matmul %25, %26, %cst_17 {dimension_numbers = #tpu.dot_dimension_numbers<[1], [0], [0], [1], [0, 0, 1, 1], [], []>} : vector<48x24xbf16>, vector<24x64xbf16>, vector<48x64xf32> -> vector<48x64xf32>
    %28 = vector.extract_strided_slice %27 {offsets = [0, 0], sizes = [16, 64], strides = [1, 1]} : vector<48x64xf32> to vector<16x64xf32>
    %29 = vector.extract_strided_slice %27 {offsets = [16, 0], sizes = [16, 64], strides = [1, 1]} : vector<48x64xf32> to vector<16x64xf32>
    %30 = vector.extract_strided_slice %27 {offsets = [32, 0], sizes = [16, 64], strides = [1, 1]} : vector<48x64xf32> to vector<16x64xf32>
    %31 = arith.addf %28, %29 : vector<16x64xf32>
    %32 = arith.addf %31, %30 : vector<16x64xf32>
    %33 = vector.broadcast %6 : vector<16x1xf32> to vector<16x64xf32>
    %34 = arith.addf %32, %33 : vector<16x64xf32>
    %35 = arith.addf %29, %30 : vector<16x64xf32>
    %36 = vector.broadcast %6 : vector<16x1xf32> to vector<16x64xf32>
    %37 = arith.addf %35, %36 : vector<16x64xf32>
    %38 = arith.addf %28, %29 : vector<16x64xf32>
    %39 = vector.broadcast %6 : vector<16x1xf32> to vector<16x64xf32>
    %40 = arith.addf %38, %39 : vector<16x64xf32>
    %cst_18 = arith.constant 0.000000e+00 : f32
    %41 = vector.broadcast %cst_18 : f32 to vector<16x64xf32>
    %cst_19 = arith.constant 0.000000e+00 : f32
    %42 = vector.broadcast %cst_19 : f32 to vector<16x64xf32>
    %cst_20 = arith.constant 0.000000e+00 : f32
    %43 = vector.broadcast %cst_20 : f32 to vector<16x64xf32>
    %44 = arith.cmpf ogt, %41, %43 : vector<16x64xf32>
    %cst_21 = arith.constant -1.000000e+30 : f32
    %45 = vector.broadcast %cst_21 : f32 to vector<16x64xf32>
    %46 = arith.select %44, %45, %16 : vector<16x64xi1>, vector<16x64xf32>
    %cst_22 = arith.constant dense<0xFF800000> : vector<64xf32>
    %47 = vector.multi_reduction <maximumf>, %46, %cst_22 [0] : vector<16x64xf32> to vector<64xf32>
    %48 = vector.shape_cast %47 : vector<64xf32> to vector<1x64xf32>
    %49 = vector.broadcast %48 : vector<1x64xf32> to vector<16x64xf32>
    %50 = arith.cmpf oeq, %46, %49 : vector<16x64xf32>
    %cst_23 = arith.constant 1.600000e+01 : f32
    %51 = vector.broadcast %cst_23 : f32 to vector<16x64xf32>
    %52 = arith.select %50, %19, %51 : vector<16x64xi1>, vector<16x64xf32>
    %cst_24 = arith.constant dense<0x7F800000> : vector<64xf32>
    %53 = vector.multi_reduction <minimumf>, %52, %cst_24 [0] : vector<16x64xf32> to vector<64xf32>
    %54 = vector.shape_cast %53 : vector<64xf32> to vector<1x64xf32>
    %55 = vector.broadcast %54 : vector<1x64xf32> to vector<16x64xf32>
    %56 = arith.cmpf oeq, %19, %55 : vector<16x64xf32>
    %57 = arith.extui %56 : vector<16x64xi1> to vector<16x64xi32>
    %58 = arith.sitofp %57 : vector<16x64xi32> to vector<16x64xf32>
    %59 = arith.addf %41, %58 : vector<16x64xf32>
    %cst_25 = arith.constant dense<0.000000e+00> : vector<8x64xf32>
    %60 = tpu.matmul %3, %58, %cst_25 {dimension_numbers = #tpu.dot_dimension_numbers<[1], [0], [0], [1], [0, 0, 1, 1], [], []>} : vector<8x16xf32>, vector<16x64xf32>, vector<8x64xf32> -> vector<8x64xf32>
    %61 = arith.subf %60, %1 : vector<8x64xf32>
    %62 = vector.extract_strided_slice %61 {offsets = [0, 0], sizes = [8, 63], strides = [1, 1]} : vector<8x64xf32> to vector<8x63xf32>
    %63 = tpu.concatenate %17, %62 in 1 : vector<8x1xf32>, vector<8x63xf32> -> vector<8x64xf32>
    %64 = vector.extract_strided_slice %61 {offsets = [0, 1], sizes = [8, 63], strides = [1, 1]} : vector<8x64xf32> to vector<8x63xf32>
    %65 = tpu.concatenate %64, %17 in 1 : vector<8x63xf32>, vector<8x1xf32> -> vector<8x64xf32>
    %66 = tpu.concatenate %63, %61, %65 in 0 : vector<8x64xf32>, vector<8x64xf32>, vector<8x64xf32> -> vector<24x64xf32>
    %67 = arith.truncf %66 : vector<24x64xf32> to vector<24x64xbf16>
    %cst_26 = arith.constant dense<0.000000e+00> : vector<48x64xf32>
    %68 = tpu.matmul %7, %67, %cst_26 {dimension_numbers = #tpu.dot_dimension_numbers<[1], [0], [0], [1], [0, 0, 1, 1], [], []>} : vector<48x24xbf16>, vector<24x64xbf16>, vector<48x64xf32> -> vector<48x64xf32>
    %69 = vector.extract_strided_slice %68 {offsets = [0, 0], sizes = [16, 64], strides = [1, 1]} : vector<48x64xf32> to vector<16x64xf32>
    %70 = vector.extract_strided_slice %68 {offsets = [16, 0], sizes = [16, 64], strides = [1, 1]} : vector<48x64xf32> to vector<16x64xf32>
    %71 = arith.addf %37, %70 : vector<16x64xf32>
    %72 = arith.addf %34, %69 : vector<16x64xf32>
    %cst_27 = arith.constant 0.000000e+00 : f32
    %73 = vector.broadcast %cst_27 : f32 to vector<16x64xf32>
    %74 = arith.cmpf ogt, %59, %73 : vector<16x64xf32>
    %cst_28 = arith.constant -1.000000e+30 : f32
    %75 = vector.broadcast %cst_28 : f32 to vector<16x64xf32>
    %76 = arith.select %74, %75, %16 : vector<16x64xi1>, vector<16x64xf32>
    %cst_29 = arith.constant dense<0xFF800000> : vector<64xf32>
    %77 = vector.multi_reduction <maximumf>, %76, %cst_29 [0] : vector<16x64xf32> to vector<64xf32>
    %78 = vector.shape_cast %77 : vector<64xf32> to vector<1x64xf32>
    %79 = vector.broadcast %78 : vector<1x64xf32> to vector<16x64xf32>
    %80 = arith.cmpf oeq, %76, %79 : vector<16x64xf32>
    %cst_30 = arith.constant 1.600000e+01 : f32
    %81 = vector.broadcast %cst_30 : f32 to vector<16x64xf32>
    %82 = arith.select %80, %19, %81 : vector<16x64xi1>, vector<16x64xf32>
    %cst_31 = arith.constant dense<0x7F800000> : vector<64xf32>
    %83 = vector.multi_reduction <minimumf>, %82, %cst_31 [0] : vector<16x64xf32> to vector<64xf32>
    %84 = vector.shape_cast %83 : vector<64xf32> to vector<1x64xf32>
    %85 = vector.broadcast %84 : vector<1x64xf32> to vector<16x64xf32>
    %86 = arith.cmpf oeq, %19, %85 : vector<16x64xf32>
    %87 = arith.extui %86 : vector<16x64xi1> to vector<16x64xi32>
    %88 = arith.sitofp %87 : vector<16x64xi32> to vector<16x64xf32>
    %89 = arith.addf %59, %88 : vector<16x64xf32>
    %cst_32 = arith.constant dense<0.000000e+00> : vector<8x64xf32>
    %90 = tpu.matmul %3, %88, %cst_32 {dimension_numbers = #tpu.dot_dimension_numbers<[1], [0], [0], [1], [0, 0, 1, 1], [], []>} : vector<8x16xf32>, vector<16x64xf32>, vector<8x64xf32> -> vector<8x64xf32>
    %91 = arith.subf %90, %1 : vector<8x64xf32>
    %92 = vector.extract_strided_slice %91 {offsets = [0, 0], sizes = [8, 63], strides = [1, 1]} : vector<8x64xf32> to vector<8x63xf32>
    %93 = tpu.concatenate %17, %92 in 1 : vector<8x1xf32>, vector<8x63xf32> -> vector<8x64xf32>
    %94 = vector.extract_strided_slice %91 {offsets = [0, 1], sizes = [8, 63], strides = [1, 1]} : vector<8x64xf32> to vector<8x63xf32>
    %95 = tpu.concatenate %94, %17 in 1 : vector<8x63xf32>, vector<8x1xf32> -> vector<8x64xf32>
    %96 = tpu.concatenate %93, %91, %95 in 0 : vector<8x64xf32>, vector<8x64xf32>, vector<8x64xf32> -> vector<24x64xf32>
    %97 = arith.truncf %96 : vector<24x64xf32> to vector<24x64xbf16>
    %cst_33 = arith.constant dense<0.000000e+00> : vector<48x64xf32>
    %98 = tpu.matmul %7, %97, %cst_33 {dimension_numbers = #tpu.dot_dimension_numbers<[1], [0], [0], [1], [0, 0, 1, 1], [], []>} : vector<48x24xbf16>, vector<24x64xbf16>, vector<48x64xf32> -> vector<48x64xf32>
    %99 = vector.extract_strided_slice %98 {offsets = [0, 0], sizes = [16, 64], strides = [1, 1]} : vector<48x64xf32> to vector<16x64xf32>
    %100 = vector.extract_strided_slice %98 {offsets = [16, 0], sizes = [16, 64], strides = [1, 1]} : vector<48x64xf32> to vector<16x64xf32>
    %101 = vector.extract_strided_slice %98 {offsets = [32, 0], sizes = [16, 64], strides = [1, 1]} : vector<48x64xf32> to vector<16x64xf32>
    %102 = arith.addf %71, %101 : vector<16x64xf32>
    %103 = arith.maximumf %42, %102 : vector<16x64xf32>
    %104 = arith.addf %72, %100 : vector<16x64xf32>
    %105 = arith.addf %34, %99 : vector<16x64xf32>
    %cst_34 = arith.constant 0.000000e+00 : f32
    %106 = vector.broadcast %cst_34 : f32 to vector<16x64xf32>
    %107 = arith.cmpf ogt, %89, %106 : vector<16x64xf32>
    %cst_35 = arith.constant -1.000000e+30 : f32
    %108 = vector.broadcast %cst_35 : f32 to vector<16x64xf32>
    %109 = arith.select %107, %108, %16 : vector<16x64xi1>, vector<16x64xf32>
    %cst_36 = arith.constant dense<0xFF800000> : vector<64xf32>
    %110 = vector.multi_reduction <maximumf>, %109, %cst_36 [0] : vector<16x64xf32> to vector<64xf32>
    %111 = vector.shape_cast %110 : vector<64xf32> to vector<1x64xf32>
    %112 = vector.broadcast %111 : vector<1x64xf32> to vector<16x64xf32>
    %113 = arith.cmpf oeq, %109, %112 : vector<16x64xf32>
    %cst_37 = arith.constant 1.600000e+01 : f32
    %114 = vector.broadcast %cst_37 : f32 to vector<16x64xf32>
    %115 = arith.select %113, %19, %114 : vector<16x64xi1>, vector<16x64xf32>
    %cst_38 = arith.constant dense<0x7F800000> : vector<64xf32>
    %116 = vector.multi_reduction <minimumf>, %115, %cst_38 [0] : vector<16x64xf32> to vector<64xf32>
    %117 = vector.shape_cast %116 : vector<64xf32> to vector<1x64xf32>
    %118 = vector.broadcast %117 : vector<1x64xf32> to vector<16x64xf32>
    %119 = arith.cmpf oeq, %19, %118 : vector<16x64xf32>
    %120 = arith.extui %119 : vector<16x64xi1> to vector<16x64xi32>
    %121 = arith.sitofp %120 : vector<16x64xi32> to vector<16x64xf32>
    %122 = arith.addf %89, %121 : vector<16x64xf32>
    %cst_39 = arith.constant dense<0.000000e+00> : vector<8x64xf32>
    %123 = tpu.matmul %3, %121, %cst_39 {dimension_numbers = #tpu.dot_dimension_numbers<[1], [0], [0], [1], [0, 0, 1, 1], [], []>} : vector<8x16xf32>, vector<16x64xf32>, vector<8x64xf32> -> vector<8x64xf32>
    %124 = arith.subf %123, %1 : vector<8x64xf32>
    %125 = vector.extract_strided_slice %124 {offsets = [0, 0], sizes = [8, 63], strides = [1, 1]} : vector<8x64xf32> to vector<8x63xf32>
    %126 = tpu.concatenate %17, %125 in 1 : vector<8x1xf32>, vector<8x63xf32> -> vector<8x64xf32>
    %127 = vector.extract_strided_slice %124 {offsets = [0, 1], sizes = [8, 63], strides = [1, 1]} : vector<8x64xf32> to vector<8x63xf32>
    %128 = tpu.concatenate %127, %17 in 1 : vector<8x63xf32>, vector<8x1xf32> -> vector<8x64xf32>
    %129 = tpu.concatenate %126, %124, %128 in 0 : vector<8x64xf32>, vector<8x64xf32>, vector<8x64xf32> -> vector<24x64xf32>
    %130 = arith.truncf %129 : vector<24x64xf32> to vector<24x64xbf16>
    %cst_40 = arith.constant dense<0.000000e+00> : vector<48x64xf32>
    %131 = tpu.matmul %7, %130, %cst_40 {dimension_numbers = #tpu.dot_dimension_numbers<[1], [0], [0], [1], [0, 0, 1, 1], [], []>} : vector<48x24xbf16>, vector<24x64xbf16>, vector<48x64xf32> -> vector<48x64xf32>
    %132 = vector.extract_strided_slice %131 {offsets = [0, 0], sizes = [16, 64], strides = [1, 1]} : vector<48x64xf32> to vector<16x64xf32>
    %133 = vector.extract_strided_slice %131 {offsets = [16, 0], sizes = [16, 64], strides = [1, 1]} : vector<48x64xf32> to vector<16x64xf32>
    %134 = vector.extract_strided_slice %131 {offsets = [32, 0], sizes = [16, 64], strides = [1, 1]} : vector<48x64xf32> to vector<16x64xf32>
    %135 = arith.addf %104, %134 : vector<16x64xf32>
    %136 = arith.maximumf %103, %135 : vector<16x64xf32>
    %137 = arith.addf %105, %133 : vector<16x64xf32>
    %138 = arith.addf %34, %132 : vector<16x64xf32>
    %cst_41 = arith.constant 0.000000e+00 : f32
    %139 = vector.broadcast %cst_41 : f32 to vector<16x64xf32>
    %140 = arith.cmpf ogt, %122, %139 : vector<16x64xf32>
    %cst_42 = arith.constant -1.000000e+30 : f32
    %141 = vector.broadcast %cst_42 : f32 to vector<16x64xf32>
    %142 = arith.select %140, %141, %16 : vector<16x64xi1>, vector<16x64xf32>
    %cst_43 = arith.constant dense<0xFF800000> : vector<64xf32>
    %143 = vector.multi_reduction <maximumf>, %142, %cst_43 [0] : vector<16x64xf32> to vector<64xf32>
    %144 = vector.shape_cast %143 : vector<64xf32> to vector<1x64xf32>
    %145 = vector.broadcast %144 : vector<1x64xf32> to vector<16x64xf32>
    %146 = arith.cmpf oeq, %142, %145 : vector<16x64xf32>
    %cst_44 = arith.constant 1.600000e+01 : f32
    %147 = vector.broadcast %cst_44 : f32 to vector<16x64xf32>
    %148 = arith.select %146, %19, %147 : vector<16x64xi1>, vector<16x64xf32>
    %cst_45 = arith.constant dense<0x7F800000> : vector<64xf32>
    %149 = vector.multi_reduction <minimumf>, %148, %cst_45 [0] : vector<16x64xf32> to vector<64xf32>
    %150 = vector.shape_cast %149 : vector<64xf32> to vector<1x64xf32>
    %151 = vector.broadcast %150 : vector<1x64xf32> to vector<16x64xf32>
    %152 = arith.cmpf oeq, %19, %151 : vector<16x64xf32>
    %153 = arith.extui %152 : vector<16x64xi1> to vector<16x64xi32>
    %154 = arith.sitofp %153 : vector<16x64xi32> to vector<16x64xf32>
    %155 = arith.addf %122, %154 : vector<16x64xf32>
    %cst_46 = arith.constant dense<0.000000e+00> : vector<8x64xf32>
    %156 = tpu.matmul %3, %154, %cst_46 {dimension_numbers = #tpu.dot_dimension_numbers<[1], [0], [0], [1], [0, 0, 1, 1], [], []>} : vector<8x16xf32>, vector<16x64xf32>, vector<8x64xf32> -> vector<8x64xf32>
    %157 = arith.subf %156, %1 : vector<8x64xf32>
    %158 = vector.extract_strided_slice %157 {offsets = [0, 0], sizes = [8, 63], strides = [1, 1]} : vector<8x64xf32> to vector<8x63xf32>
    %159 = tpu.concatenate %17, %158 in 1 : vector<8x1xf32>, vector<8x63xf32> -> vector<8x64xf32>
    %160 = vector.extract_strided_slice %157 {offsets = [0, 1], sizes = [8, 63], strides = [1, 1]} : vector<8x64xf32> to vector<8x63xf32>
    %161 = tpu.concatenate %160, %17 in 1 : vector<8x63xf32>, vector<8x1xf32> -> vector<8x64xf32>
    %162 = tpu.concatenate %159, %157, %161 in 0 : vector<8x64xf32>, vector<8x64xf32>, vector<8x64xf32> -> vector<24x64xf32>
    %163 = arith.truncf %162 : vector<24x64xf32> to vector<24x64xbf16>
    %cst_47 = arith.constant dense<0.000000e+00> : vector<48x64xf32>
    %164 = tpu.matmul %7, %163, %cst_47 {dimension_numbers = #tpu.dot_dimension_numbers<[1], [0], [0], [1], [0, 0, 1, 1], [], []>} : vector<48x24xbf16>, vector<24x64xbf16>, vector<48x64xf32> -> vector<48x64xf32>
    %165 = vector.extract_strided_slice %164 {offsets = [0, 0], sizes = [16, 64], strides = [1, 1]} : vector<48x64xf32> to vector<16x64xf32>
    %166 = vector.extract_strided_slice %164 {offsets = [16, 0], sizes = [16, 64], strides = [1, 1]} : vector<48x64xf32> to vector<16x64xf32>
    %167 = vector.extract_strided_slice %164 {offsets = [32, 0], sizes = [16, 64], strides = [1, 1]} : vector<48x64xf32> to vector<16x64xf32>
    %168 = arith.addf %137, %167 : vector<16x64xf32>
    %169 = arith.maximumf %136, %168 : vector<16x64xf32>
    %170 = arith.addf %138, %166 : vector<16x64xf32>
    %171 = arith.addf %34, %165 : vector<16x64xf32>
    %cst_48 = arith.constant 0.000000e+00 : f32
    %172 = vector.broadcast %cst_48 : f32 to vector<16x64xf32>
    %173 = arith.cmpf ogt, %155, %172 : vector<16x64xf32>
    %cst_49 = arith.constant -1.000000e+30 : f32
    %174 = vector.broadcast %cst_49 : f32 to vector<16x64xf32>
    %175 = arith.select %173, %174, %16 : vector<16x64xi1>, vector<16x64xf32>
    %cst_50 = arith.constant dense<0xFF800000> : vector<64xf32>
    %176 = vector.multi_reduction <maximumf>, %175, %cst_50 [0] : vector<16x64xf32> to vector<64xf32>
    %177 = vector.shape_cast %176 : vector<64xf32> to vector<1x64xf32>
    %178 = vector.broadcast %177 : vector<1x64xf32> to vector<16x64xf32>
    %179 = arith.cmpf oeq, %175, %178 : vector<16x64xf32>
    %cst_51 = arith.constant 1.600000e+01 : f32
    %180 = vector.broadcast %cst_51 : f32 to vector<16x64xf32>
    %181 = arith.select %179, %19, %180 : vector<16x64xi1>, vector<16x64xf32>
    %cst_52 = arith.constant dense<0x7F800000> : vector<64xf32>
    %182 = vector.multi_reduction <minimumf>, %181, %cst_52 [0] : vector<16x64xf32> to vector<64xf32>
    %183 = vector.shape_cast %182 : vector<64xf32> to vector<1x64xf32>
    %184 = vector.broadcast %183 : vector<1x64xf32> to vector<16x64xf32>
    %185 = arith.cmpf oeq, %19, %184 : vector<16x64xf32>
    %186 = arith.extui %185 : vector<16x64xi1> to vector<16x64xi32>
    %187 = arith.sitofp %186 : vector<16x64xi32> to vector<16x64xf32>
    %188 = arith.addf %155, %187 : vector<16x64xf32>
    %cst_53 = arith.constant dense<0.000000e+00> : vector<8x64xf32>
    %189 = tpu.matmul %3, %187, %cst_53 {dimension_numbers = #tpu.dot_dimension_numbers<[1], [0], [0], [1], [0, 0, 1, 1], [], []>} : vector<8x16xf32>, vector<16x64xf32>, vector<8x64xf32> -> vector<8x64xf32>
    %190 = arith.subf %189, %1 : vector<8x64xf32>
    %191 = vector.extract_strided_slice %190 {offsets = [0, 0], sizes = [8, 63], strides = [1, 1]} : vector<8x64xf32> to vector<8x63xf32>
    %192 = tpu.concatenate %17, %191 in 1 : vector<8x1xf32>, vector<8x63xf32> -> vector<8x64xf32>
    %193 = vector.extract_strided_slice %190 {offsets = [0, 1], sizes = [8, 63], strides = [1, 1]} : vector<8x64xf32> to vector<8x63xf32>
    %194 = tpu.concatenate %193, %17 in 1 : vector<8x63xf32>, vector<8x1xf32> -> vector<8x64xf32>
    %195 = tpu.concatenate %192, %190, %194 in 0 : vector<8x64xf32>, vector<8x64xf32>, vector<8x64xf32> -> vector<24x64xf32>
    %196 = arith.truncf %195 : vector<24x64xf32> to vector<24x64xbf16>
    %cst_54 = arith.constant dense<0.000000e+00> : vector<48x64xf32>
    %197 = tpu.matmul %7, %196, %cst_54 {dimension_numbers = #tpu.dot_dimension_numbers<[1], [0], [0], [1], [0, 0, 1, 1], [], []>} : vector<48x24xbf16>, vector<24x64xbf16>, vector<48x64xf32> -> vector<48x64xf32>
    %198 = vector.extract_strided_slice %197 {offsets = [0, 0], sizes = [16, 64], strides = [1, 1]} : vector<48x64xf32> to vector<16x64xf32>
    %199 = vector.extract_strided_slice %197 {offsets = [16, 0], sizes = [16, 64], strides = [1, 1]} : vector<48x64xf32> to vector<16x64xf32>
    %200 = vector.extract_strided_slice %197 {offsets = [32, 0], sizes = [16, 64], strides = [1, 1]} : vector<48x64xf32> to vector<16x64xf32>
    %201 = arith.addf %170, %200 : vector<16x64xf32>
    %202 = arith.maximumf %169, %201 : vector<16x64xf32>
    %203 = arith.addf %171, %199 : vector<16x64xf32>
    %204 = arith.addf %34, %198 : vector<16x64xf32>
    %cst_55 = arith.constant 0.000000e+00 : f32
    %205 = vector.broadcast %cst_55 : f32 to vector<16x64xf32>
    %206 = arith.cmpf ogt, %188, %205 : vector<16x64xf32>
    %cst_56 = arith.constant -1.000000e+30 : f32
    %207 = vector.broadcast %cst_56 : f32 to vector<16x64xf32>
    %208 = arith.select %206, %207, %16 : vector<16x64xi1>, vector<16x64xf32>
    %cst_57 = arith.constant dense<0xFF800000> : vector<64xf32>
    %209 = vector.multi_reduction <maximumf>, %208, %cst_57 [0] : vector<16x64xf32> to vector<64xf32>
    %210 = vector.shape_cast %209 : vector<64xf32> to vector<1x64xf32>
    %211 = vector.broadcast %210 : vector<1x64xf32> to vector<16x64xf32>
    %212 = arith.cmpf oeq, %208, %211 : vector<16x64xf32>
    %cst_58 = arith.constant 1.600000e+01 : f32
    %213 = vector.broadcast %cst_58 : f32 to vector<16x64xf32>
    %214 = arith.select %212, %19, %213 : vector<16x64xi1>, vector<16x64xf32>
    %cst_59 = arith.constant dense<0x7F800000> : vector<64xf32>
    %215 = vector.multi_reduction <minimumf>, %214, %cst_59 [0] : vector<16x64xf32> to vector<64xf32>
    %216 = vector.shape_cast %215 : vector<64xf32> to vector<1x64xf32>
    %217 = vector.broadcast %216 : vector<1x64xf32> to vector<16x64xf32>
    %218 = arith.cmpf oeq, %19, %217 : vector<16x64xf32>
    %219 = arith.extui %218 : vector<16x64xi1> to vector<16x64xi32>
    %220 = arith.sitofp %219 : vector<16x64xi32> to vector<16x64xf32>
    %221 = arith.addf %188, %220 : vector<16x64xf32>
    %cst_60 = arith.constant dense<0.000000e+00> : vector<8x64xf32>
    %222 = tpu.matmul %3, %220, %cst_60 {dimension_numbers = #tpu.dot_dimension_numbers<[1], [0], [0], [1], [0, 0, 1, 1], [], []>} : vector<8x16xf32>, vector<16x64xf32>, vector<8x64xf32> -> vector<8x64xf32>
    %223 = arith.subf %222, %1 : vector<8x64xf32>
    %224 = vector.extract_strided_slice %223 {offsets = [0, 0], sizes = [8, 63], strides = [1, 1]} : vector<8x64xf32> to vector<8x63xf32>
    %225 = tpu.concatenate %17, %224 in 1 : vector<8x1xf32>, vector<8x63xf32> -> vector<8x64xf32>
    %226 = vector.extract_strided_slice %223 {offsets = [0, 1], sizes = [8, 63], strides = [1, 1]} : vector<8x64xf32> to vector<8x63xf32>
    %227 = tpu.concatenate %226, %17 in 1 : vector<8x63xf32>, vector<8x1xf32> -> vector<8x64xf32>
    %228 = tpu.concatenate %225, %223, %227 in 0 : vector<8x64xf32>, vector<8x64xf32>, vector<8x64xf32> -> vector<24x64xf32>
    %229 = arith.truncf %228 : vector<24x64xf32> to vector<24x64xbf16>
    %cst_61 = arith.constant dense<0.000000e+00> : vector<48x64xf32>
    %230 = tpu.matmul %7, %229, %cst_61 {dimension_numbers = #tpu.dot_dimension_numbers<[1], [0], [0], [1], [0, 0, 1, 1], [], []>} : vector<48x24xbf16>, vector<24x64xbf16>, vector<48x64xf32> -> vector<48x64xf32>
    %231 = vector.extract_strided_slice %230 {offsets = [0, 0], sizes = [16, 64], strides = [1, 1]} : vector<48x64xf32> to vector<16x64xf32>
    %232 = vector.extract_strided_slice %230 {offsets = [16, 0], sizes = [16, 64], strides = [1, 1]} : vector<48x64xf32> to vector<16x64xf32>
    %233 = vector.extract_strided_slice %230 {offsets = [32, 0], sizes = [16, 64], strides = [1, 1]} : vector<48x64xf32> to vector<16x64xf32>
    %234 = arith.addf %203, %233 : vector<16x64xf32>
    %235 = arith.maximumf %202, %234 : vector<16x64xf32>
    %236 = arith.addf %204, %232 : vector<16x64xf32>
    %237 = arith.addf %34, %231 : vector<16x64xf32>
    %cst_62 = arith.constant 0.000000e+00 : f32
    %238 = vector.broadcast %cst_62 : f32 to vector<16x64xf32>
    %239 = arith.cmpf ogt, %221, %238 : vector<16x64xf32>
    %cst_63 = arith.constant -1.000000e+30 : f32
    %240 = vector.broadcast %cst_63 : f32 to vector<16x64xf32>
    %241 = arith.select %239, %240, %16 : vector<16x64xi1>, vector<16x64xf32>
    %cst_64 = arith.constant dense<0xFF800000> : vector<64xf32>
    %242 = vector.multi_reduction <maximumf>, %241, %cst_64 [0] : vector<16x64xf32> to vector<64xf32>
    %243 = vector.shape_cast %242 : vector<64xf32> to vector<1x64xf32>
    %244 = vector.broadcast %243 : vector<1x64xf32> to vector<16x64xf32>
    %245 = arith.cmpf oeq, %241, %244 : vector<16x64xf32>
    %cst_65 = arith.constant 1.600000e+01 : f32
    %246 = vector.broadcast %cst_65 : f32 to vector<16x64xf32>
    %247 = arith.select %245, %19, %246 : vector<16x64xi1>, vector<16x64xf32>
    %cst_66 = arith.constant dense<0x7F800000> : vector<64xf32>
    %248 = vector.multi_reduction <minimumf>, %247, %cst_66 [0] : vector<16x64xf32> to vector<64xf32>
    %249 = vector.shape_cast %248 : vector<64xf32> to vector<1x64xf32>
    %250 = vector.broadcast %249 : vector<1x64xf32> to vector<16x64xf32>
    %251 = arith.cmpf oeq, %19, %250 : vector<16x64xf32>
    %252 = arith.extui %251 : vector<16x64xi1> to vector<16x64xi32>
    %253 = arith.sitofp %252 : vector<16x64xi32> to vector<16x64xf32>
    %254 = arith.addf %221, %253 : vector<16x64xf32>
    %cst_67 = arith.constant dense<0.000000e+00> : vector<8x64xf32>
    %255 = tpu.matmul %3, %253, %cst_67 {dimension_numbers = #tpu.dot_dimension_numbers<[1], [0], [0], [1], [0, 0, 1, 1], [], []>} : vector<8x16xf32>, vector<16x64xf32>, vector<8x64xf32> -> vector<8x64xf32>
    %256 = arith.subf %255, %1 : vector<8x64xf32>
    %257 = vector.extract_strided_slice %256 {offsets = [0, 0], sizes = [8, 63], strides = [1, 1]} : vector<8x64xf32> to vector<8x63xf32>
    %258 = tpu.concatenate %17, %257 in 1 : vector<8x1xf32>, vector<8x63xf32> -> vector<8x64xf32>
    %259 = vector.extract_strided_slice %256 {offsets = [0, 1], sizes = [8, 63], strides = [1, 1]} : vector<8x64xf32> to vector<8x63xf32>
    %260 = tpu.concatenate %259, %17 in 1 : vector<8x63xf32>, vector<8x1xf32> -> vector<8x64xf32>
    %261 = tpu.concatenate %258, %256, %260 in 0 : vector<8x64xf32>, vector<8x64xf32>, vector<8x64xf32> -> vector<24x64xf32>
    %262 = arith.truncf %261 : vector<24x64xf32> to vector<24x64xbf16>
    %cst_68 = arith.constant dense<0.000000e+00> : vector<48x64xf32>
    %263 = tpu.matmul %7, %262, %cst_68 {dimension_numbers = #tpu.dot_dimension_numbers<[1], [0], [0], [1], [0, 0, 1, 1], [], []>} : vector<48x24xbf16>, vector<24x64xbf16>, vector<48x64xf32> -> vector<48x64xf32>
    %264 = vector.extract_strided_slice %263 {offsets = [0, 0], sizes = [16, 64], strides = [1, 1]} : vector<48x64xf32> to vector<16x64xf32>
    %265 = vector.extract_strided_slice %263 {offsets = [16, 0], sizes = [16, 64], strides = [1, 1]} : vector<48x64xf32> to vector<16x64xf32>
    %266 = vector.extract_strided_slice %263 {offsets = [32, 0], sizes = [16, 64], strides = [1, 1]} : vector<48x64xf32> to vector<16x64xf32>
    %267 = arith.addf %236, %266 : vector<16x64xf32>
    %268 = arith.maximumf %235, %267 : vector<16x64xf32>
    %269 = arith.addf %237, %265 : vector<16x64xf32>
    %270 = arith.addf %34, %264 : vector<16x64xf32>
    %cst_69 = arith.constant 0.000000e+00 : f32
    %271 = vector.broadcast %cst_69 : f32 to vector<16x64xf32>
    %272 = arith.cmpf ogt, %254, %271 : vector<16x64xf32>
    %cst_70 = arith.constant -1.000000e+30 : f32
    %273 = vector.broadcast %cst_70 : f32 to vector<16x64xf32>
    %274 = arith.select %272, %273, %16 : vector<16x64xi1>, vector<16x64xf32>
    %cst_71 = arith.constant dense<0xFF800000> : vector<64xf32>
    %275 = vector.multi_reduction <maximumf>, %274, %cst_71 [0] : vector<16x64xf32> to vector<64xf32>
    %276 = vector.shape_cast %275 : vector<64xf32> to vector<1x64xf32>
    %277 = vector.broadcast %276 : vector<1x64xf32> to vector<16x64xf32>
    %278 = arith.cmpf oeq, %274, %277 : vector<16x64xf32>
    %cst_72 = arith.constant 1.600000e+01 : f32
    %279 = vector.broadcast %cst_72 : f32 to vector<16x64xf32>
    %280 = arith.select %278, %19, %279 : vector<16x64xi1>, vector<16x64xf32>
    %cst_73 = arith.constant dense<0x7F800000> : vector<64xf32>
    %281 = vector.multi_reduction <minimumf>, %280, %cst_73 [0] : vector<16x64xf32> to vector<64xf32>
    %282 = vector.shape_cast %281 : vector<64xf32> to vector<1x64xf32>
    %283 = vector.broadcast %282 : vector<1x64xf32> to vector<16x64xf32>
    %284 = arith.cmpf oeq, %19, %283 : vector<16x64xf32>
    %285 = arith.extui %284 : vector<16x64xi1> to vector<16x64xi32>
    %286 = arith.sitofp %285 : vector<16x64xi32> to vector<16x64xf32>
    %287 = arith.addf %254, %286 : vector<16x64xf32>
    %cst_74 = arith.constant dense<0.000000e+00> : vector<8x64xf32>
    %288 = tpu.matmul %3, %286, %cst_74 {dimension_numbers = #tpu.dot_dimension_numbers<[1], [0], [0], [1], [0, 0, 1, 1], [], []>} : vector<8x16xf32>, vector<16x64xf32>, vector<8x64xf32> -> vector<8x64xf32>
    %289 = arith.subf %288, %1 : vector<8x64xf32>
    %290 = vector.extract_strided_slice %289 {offsets = [0, 0], sizes = [8, 63], strides = [1, 1]} : vector<8x64xf32> to vector<8x63xf32>
    %291 = tpu.concatenate %17, %290 in 1 : vector<8x1xf32>, vector<8x63xf32> -> vector<8x64xf32>
    %292 = vector.extract_strided_slice %289 {offsets = [0, 1], sizes = [8, 63], strides = [1, 1]} : vector<8x64xf32> to vector<8x63xf32>
    %293 = tpu.concatenate %292, %17 in 1 : vector<8x63xf32>, vector<8x1xf32> -> vector<8x64xf32>
    %294 = tpu.concatenate %291, %289, %293 in 0 : vector<8x64xf32>, vector<8x64xf32>, vector<8x64xf32> -> vector<24x64xf32>
    %295 = arith.truncf %294 : vector<24x64xf32> to vector<24x64xbf16>
    %cst_75 = arith.constant dense<0.000000e+00> : vector<48x64xf32>
    %296 = tpu.matmul %7, %295, %cst_75 {dimension_numbers = #tpu.dot_dimension_numbers<[1], [0], [0], [1], [0, 0, 1, 1], [], []>} : vector<48x24xbf16>, vector<24x64xbf16>, vector<48x64xf32> -> vector<48x64xf32>
    %297 = vector.extract_strided_slice %296 {offsets = [0, 0], sizes = [16, 64], strides = [1, 1]} : vector<48x64xf32> to vector<16x64xf32>
    %298 = vector.extract_strided_slice %296 {offsets = [16, 0], sizes = [16, 64], strides = [1, 1]} : vector<48x64xf32> to vector<16x64xf32>
    %299 = vector.extract_strided_slice %296 {offsets = [32, 0], sizes = [16, 64], strides = [1, 1]} : vector<48x64xf32> to vector<16x64xf32>
    %300 = arith.addf %269, %299 : vector<16x64xf32>
    %301 = arith.maximumf %268, %300 : vector<16x64xf32>
    %302 = arith.addf %270, %298 : vector<16x64xf32>
    %303 = arith.addf %40, %297 : vector<16x64xf32>
    %cst_76 = arith.constant 0.000000e+00 : f32
    %304 = vector.broadcast %cst_76 : f32 to vector<16x64xf32>
    %305 = arith.cmpf ogt, %287, %304 : vector<16x64xf32>
    %cst_77 = arith.constant -1.000000e+30 : f32
    %306 = vector.broadcast %cst_77 : f32 to vector<16x64xf32>
    %307 = arith.select %305, %306, %16 : vector<16x64xi1>, vector<16x64xf32>
    %cst_78 = arith.constant dense<0xFF800000> : vector<64xf32>
    %308 = vector.multi_reduction <maximumf>, %307, %cst_78 [0] : vector<16x64xf32> to vector<64xf32>
    %309 = vector.shape_cast %308 : vector<64xf32> to vector<1x64xf32>
    %310 = vector.broadcast %309 : vector<1x64xf32> to vector<16x64xf32>
    %311 = arith.cmpf oeq, %307, %310 : vector<16x64xf32>
    %cst_79 = arith.constant 1.600000e+01 : f32
    %312 = vector.broadcast %cst_79 : f32 to vector<16x64xf32>
    %313 = arith.select %311, %19, %312 : vector<16x64xi1>, vector<16x64xf32>
    %cst_80 = arith.constant dense<0x7F800000> : vector<64xf32>
    %314 = vector.multi_reduction <minimumf>, %313, %cst_80 [0] : vector<16x64xf32> to vector<64xf32>
    %315 = vector.shape_cast %314 : vector<64xf32> to vector<1x64xf32>
    %316 = vector.broadcast %315 : vector<1x64xf32> to vector<16x64xf32>
    %317 = arith.cmpf oeq, %19, %316 : vector<16x64xf32>
    %318 = arith.extui %317 : vector<16x64xi1> to vector<16x64xi32>
    %319 = arith.sitofp %318 : vector<16x64xi32> to vector<16x64xf32>
    %cst_81 = arith.constant dense<0.000000e+00> : vector<8x64xf32>
    %320 = tpu.matmul %3, %319, %cst_81 {dimension_numbers = #tpu.dot_dimension_numbers<[1], [0], [0], [1], [0, 0, 1, 1], [], []>} : vector<8x16xf32>, vector<16x64xf32>, vector<8x64xf32> -> vector<8x64xf32>
    %321 = arith.subf %320, %1 : vector<8x64xf32>
    %322 = vector.extract_strided_slice %321 {offsets = [0, 0], sizes = [8, 63], strides = [1, 1]} : vector<8x64xf32> to vector<8x63xf32>
    %323 = tpu.concatenate %17, %322 in 1 : vector<8x1xf32>, vector<8x63xf32> -> vector<8x64xf32>
    %324 = vector.extract_strided_slice %321 {offsets = [0, 1], sizes = [8, 63], strides = [1, 1]} : vector<8x64xf32> to vector<8x63xf32>
    %325 = tpu.concatenate %324, %17 in 1 : vector<8x63xf32>, vector<8x1xf32> -> vector<8x64xf32>
    %326 = tpu.concatenate %323, %321, %325 in 0 : vector<8x64xf32>, vector<8x64xf32>, vector<8x64xf32> -> vector<24x64xf32>
    %327 = arith.truncf %326 : vector<24x64xf32> to vector<24x64xbf16>
    %cst_82 = arith.constant dense<0.000000e+00> : vector<48x64xf32>
    %328 = tpu.matmul %7, %327, %cst_82 {dimension_numbers = #tpu.dot_dimension_numbers<[1], [0], [0], [1], [0, 0, 1, 1], [], []>} : vector<48x24xbf16>, vector<24x64xbf16>, vector<48x64xf32> -> vector<48x64xf32>
    %329 = vector.extract_strided_slice %328 {offsets = [16, 0], sizes = [16, 64], strides = [1, 1]} : vector<48x64xf32> to vector<16x64xf32>
    %330 = vector.extract_strided_slice %328 {offsets = [32, 0], sizes = [16, 64], strides = [1, 1]} : vector<48x64xf32> to vector<16x64xf32>
    %331 = arith.addf %302, %330 : vector<16x64xf32>
    %332 = arith.maximumf %301, %331 : vector<16x64xf32>
    %333 = arith.addf %303, %329 : vector<16x64xf32>
    %334 = arith.maximumf %332, %333 : vector<16x64xf32>
    %c0_83 = arith.constant 0 : index
    %c0_84 = arith.constant 0 : index
    %c0_85 = arith.constant 0 : index
    %335 = vector.load %arg7[%c0_83, %c0_84, %c0_85] : memref<1x16x64xf32, #tpu.memory_space<vmem>>, vector<1x16x64xf32>
    %336 = vector.shape_cast %335 : vector<1x16x64xf32> to vector<16x64xf32>
    %337 = vector.shape_cast %334 : vector<16x64xf32> to vector<1x16x64xf32>
    tpu.vector_store %arg7[%c0_83, %c0_84, %c0_85], %337 {strides = array<i32>} : memref<1x16x64xf32, #tpu.memory_space<vmem>>, vector<1x16x64xf32>,
    return
  }
  func.func @transform_0(%arg0: i32) -> (i32, i32, i32) {
    %c0_i32 = arith.constant 0 : i32
    %c0_i32_0 = arith.constant 0 : i32
    %c0_i32_1 = arith.constant 0 : i32
    return %arg0, %c0_i32, %c0_i32_0 : i32, i32, i32
  }
  func.func @transform_1(%arg0: i32) -> (i32, i32, i32) {
    %c0_i32 = arith.constant 0 : i32
    %c0_i32_0 = arith.constant 0 : i32
    %c0_i32_1 = arith.constant 0 : i32
    return %arg0, %c0_i32, %c0_i32_0 : i32, i32, i32
  }
  func.func @transform_2(%arg0: i32) -> (i32, i32, i32) {
    %c0_i32 = arith.constant 0 : i32
    %c0_i32_0 = arith.constant 0 : i32
    %c0_i32_1 = arith.constant 0 : i32
    return %arg0, %c0_i32, %c0_i32_0 : i32, i32, i32
  }
  func.func @transform_3(%arg0: i32) -> (i32, i32) {
    %c0_i32 = arith.constant 0 : i32
    %c0_i32_0 = arith.constant 0 : i32
    %c0_i32_1 = arith.constant 0 : i32
    return %c0_i32, %c0_i32_0 : i32, i32
  }
  func.func @transform_4(%arg0: i32) -> (i32, i32) {
    %c0_i32 = arith.constant 0 : i32
    %c0_i32_0 = arith.constant 0 : i32
    %c0_i32_1 = arith.constant 0 : i32
    return %c0_i32, %c0_i32_0 : i32, i32
  }
  func.func @transform_5(%arg0: i32) -> (i32, i32) {
    %c0_i32 = arith.constant 0 : i32
    %c0_i32_0 = arith.constant 0 : i32
    %c0_i32_1 = arith.constant 0 : i32
    return %c0_i32, %c0_i32_0 : i32, i32
  }
  func.func @transform_6(%arg0: i32) -> (i32, i32, i32) {
    %c0_i32 = arith.constant 0 : i32
    %c0_i32_0 = arith.constant 0 : i32
    %c0_i32_1 = arith.constant 0 : i32
    return %arg0, %c0_i32, %c0_i32_0 : i32, i32, i32
  }
}

</mosaic_0001>

<bundles_post_ra>
// kernel: dy_graph_conv2d.1
= control target key start
LH: loop header
LB: loop body
LE: loop exit
PB: predicated region body
PF: predicated region fallthrough
CT: control target
= control target key end

     0   :  { %s1689_s21 = smov 0   ;;  %s2225_s0 = inlined_call_operand.vmem [shape: f32[2,8,64], index: 0, kind: input, shape index: {}]   ;;  %s2226_s1 = inlined_call_operand.vmem [shape: f32[2,8,16], index: 1, kind: input, shape index: {}]   ;;  %s2227_s2 = inlined_call_operand.vmem [shape: f32[2,16,8], index: 2, kind: input, shape index: {}]   ;;  %s2228_s3 = inlined_call_operand.vmem [shape: bf16[48,24], index: 3, kind: input, shape index: {}]   ;;  %s2229_s4 = inlined_call_operand.vmem [shape: bf16[48,24], index: 4, kind: input, shape index: {}]   ;;  %s2230_s5 = inlined_call_operand.vmem [shape: f32[16,1], index: 5, kind: input, shape index: {}]   ;;  %s2231_s6 = inlined_call_operand.vmem [shape: f32[2,16,64], index: 6, kind: output, shape index: {}]  }
   0x1 LB: > { %s1456_s22 = sadd.s32 4294967295, %s1646_s21   ;;  %p1460_p0 = scmp.ge.s32.totalorder %s1646_s21, 1  ;;  %s1646_s21 = sphi %s1689_s21, %s16_s21  }
   0x2   : > { %p230_p1 = scmp.lt.s32.totalorder %s1646_s21, 3 }
   0x4   : > { %p231_p2 = pnand %p1460_p0, %p230_p1 }
   0x5   : > { %p268_p3 = scmp.lt.s32.totalorder (!%p231_p2), %s1456_s22, 1  ;;  %s1648_s7 = smov (!%p231_p2), 127  }
   0x6   : > { %234 = sbr.rel (%p231_p2) target bundleno = 1162 (0x48a), region = 44  ;;  %s1649_s8 = smov (!%p231_p2), 1  }
   0xb   : > { %s2235_s22 = smov (!%p268_p3, %s1456_s22), 1  ;;  %vm300_vm0 = vcmask 523264   ;;  %vm320_vm4 = vcmask 64512   ;;  %v350_v23 = vlaneseq  ;;  %v1650_v47 = vmov 0.0  }
   0xc   : > { %s1461_s23 = sshll.u32 %s2235_s22, 3  ;;  %s1610_s27 = sshll.u32 %s2235_s22, 4  ;;  %v1651_v49 = vmov 1.0   ;;  %vm482_vm9 = vcmask 130048   ;;  %vm364_vm12 = vcmask 515072   ;;  %vm399_vm13 = vcmask 1043456  }
   0xd   : > { %s1705_s26 = scalar_lea.vmem %s2225_s0, %s1461_s23  ;;  %s280_s30 = scalar_lea.vmem %s2227_s2, %s1610_s27  ;;  %v351_v27 = vshrl.u32 %v350_v23, 7  ;;  %vm359_vm14 = vcmask 7168  }
   0xe   : > { %v1708_v0 = vld [vmem:[%s1705_s26] sm:$0xff]  ;;  %v290_v18 = vld [vmem:[%s280_s30 + $0x8] sm:$0xff]  ;;  %s275_s11 = scalar_lea.vmem %s2226_s1, %s1461_s23  ;;  %vm1481_vm15 = vmneg %vm359_vm14  ;;  %s285_s9 = scalar_lea.vmem %s2231_s6, %s1610_s27 }
   0xf   : > { %v299_v1 = vmul.f32 %v1708_v0, %v1708_v0  ;;  %v289_v19 = vld [vmem:[%s280_s30] sm:$0xff]  ;;  %361 = vrot.lane.b32.xlu0 %v1708_v0, %s1648_s7  ;;  %v352_v30 = vadd.s32 8, %v351_v27  ;;  %v1732_v33 = vcvt.s32.f32 %v351_v27 }
  0x10   : > { %v1752_v51 = vld [vmem:[%s275_s11] sm:$0xff] }
  0x11   : > { %v301_v2 = vsel %vm300_vm0, %v299_v1, 0.0  ;;  %v1734_v34 = vcvt.s32.f32 %v352_v30 }
  0x12   : > { %v302_v3 = vrot.slane %v301_v2, 4 }
  0x14   : > { %v303_v4 = vadd.f32 %v302_v3, %v301_v2 }
  0x16   : > { %v304_v5 = vrot.slane %v303_v4, 2 }
  0x17   : > { %356 = vrot.lane.b32.xlu0 %v1708_v0, %s1649_s8 }
  0x18   : > { %v305_v6 = vadd.f32 %v304_v5, %v303_v4 }
  0x1a   : > { %v306_v7 = vrot.slane %v305_v6, 1 }
  0x1c   : > { %v307_v8 = vadd.f32 %v306_v7, %v305_v6 }
  0x1e   : > { %v308_v9 = vmax.f32 %v307_v8, 1e-24 }
  0x20   : > { %1637 = vrsqrt.f32 %v308_v9  ;;  %vm315_vm1 = vweird.f32 %v308_v9 }
  0x26   : > { %v1638_v10 = vpop.eup %1637 }
  0x27   : > { %v310_v11 = vmul.f32 %v1638_v10, %v308_v9  ;;  %vm316_vm2 = vweird.f32 %v1638_v10  ;;  %v1615_v9 = vld [vmem:[%s2228_s3] sm:$0xff] }
  0x28   : > { %vm317_vm3 = vmor %vm315_vm1, %vm316_vm2  ;;  %vm1652_vm1 = vmmov 1  }
  0x29   : > { %v311_v12 = vmul.f32 %v1638_v10, %v310_v11  ;;  %vm1763_vm2 = vmpackc.low %vm1652_vm1, %vm1481_vm15 }
  0x2b   : > { %v312_v13 = vmul.f32 0.5, %v311_v12 }
  0x2d   : > { %v313_v14 = vsub.f32 1.5, %v312_v13 }
  0x2f   : > { %v314_v15 = vmul.f32 %v1638_v10, %v313_v14 }
  0x31   : > { %v318_v16 = vsel %vm317_vm3, %v1638_v10, %v314_v15 }
  0x32   : > { %v319_v17 = vmul.f32 %v318_v16, %v1708_v0 }
  0x34   : > { %1618 = vmatpush.msra.mxu2 %v319_v17  ;;  %342 = vmatpush.msra.mxu0 %v319_v17 }
  0x35   : > { %1468 = vmatmul.msk.f32.vlgmr.msra.gmra.mxu2 %vm320_vm4, %v290_v18  ;;  %1467 = vmatmul.msk.f32.vlgmr.msra.gmra.mxu0 %vm320_vm4, %v289_v19 }
  0x81   : > { %v362_v59 = vpop.permute.xlu0 %361 }
  0x82   : > { %v365_v61 = vsel %vm364_vm12, %v362_v59, 0.0 }
  0x83   : > { %v373_v62 = vpack.c.bf16 %v365_v61, %v365_v61 }
  0x85   : > { %v401_v1 = vsel %vm399_vm13, %v373_v62, 0 }
  0x86   : > { %409 = vmatpush.bf16.msra.mxu1 %v401_v1 }
  0x89   : > { %v357_v4 = vpop.permute.xlu0 %356 }
  0x8a   : > { %v1483_v6 = vpack.c.bf16 %v1708_v0, %v357_v4 }
  0x8c   : > { %1484 = vmatpush.bf16.msk.msra.mxu1 %vm1763_vm2, %v1483_v6 }
  0xb2   : > { %v1724_v20 = vpop.f32.mrf.mxu0 }
  0xb3   : > { %v452_v21 = vsel %vm300_vm0, %v1724_v20, -inf }
  0xb8   : > { %v1728_v22 = vpop.f32.mrf.mxu2 }
  0xb9   : > { %v453_v24 = vsel %vm300_vm0, %v1728_v22, -inf }
  0xba   : > { %v454_v25 = vmax.f32 %v452_v21, %v453_v24 }
  0xbc   : > { %v455_v26 = vrot.slane %v454_v25, 4 }
  0xbe   : > { %v456_v28 = vmax.f32 %v454_v25, %v455_v26 }
  0xc0   : > { %v457_v29 = vrot.slane %v456_v28, 2 }
  0xc2   : > { %v458_v31 = vmax.f32 %v456_v28, %v457_v29 }
  0xc4   : > { %v459_v32 = vrot.slane %v458_v31, 1 }
  0xc6   : > { %v460_v35 = vmax.f32 %v458_v31, %v459_v32 }
  0xc8   : > { %vm461_vm5 = vcmp.eq.f32.partialorder %v1724_v20, %v460_v35  ;;  %vm462_vm6 = vcmp.eq.f32.partialorder %v1728_v22, %v460_v35 }
  0xc9   : > { %v463_v36 = vsel %vm461_vm5, %v1732_v33, 16.0  ;;  %v464_v37 = vsel %vm462_vm6, %v1734_v34, 16.0  ;;  %vm389_vm5 = vcmask 195584  }
  0xca   : > { %v465_v38 = vsel %vm300_vm0, %v463_v36, inf  ;;  %v466_v39 = vsel %vm300_vm0, %v464_v37, inf  ;;  %1485 = vmatmul.msk.bf16.vlgmr.msra.gmra.mxu1 %vm389_vm5, %v1615_v9 }
  0xcb   : > { %v467_v40 = vmin.f32 %v465_v38, %v466_v39 }
  0xcd   : > { %v468_v41 = vrot.slane %v467_v40, 4 }
  0xcf   : > { %v469_v42 = vmin.f32 %v467_v40, %v468_v41 }
  0xd1   : > { %v470_v43 = vrot.slane %v469_v42, 2 }
  0xd3   : > { %v471_v44 = vmin.f32 %v469_v42, %v470_v43 }
  0xd5   : > { %v472_v45 = vrot.slane %v471_v44, 1 }
  0xd7   : > { %v473_v46 = vmin.f32 %v471_v44, %v472_v45 }
  0xd9   : > { %vm475_vm7 = vcmp.eq.f32.partialorder %v1734_v34, %v473_v46  ;;  %vm474_vm8 = vcmp.eq.f32.partialorder %v1732_v33, %v473_v46 }
  0xda   : > { %v1489_v48 = vsel %vm475_vm7, 1.0, %v1650_v47  ;;  %1490 = vmatpush.msk.msrb.mxu2 %vm475_vm7, %v1651_v49  ;;  %v1488_v50 = vsel %vm474_vm8, 1.0, %v1650_v47 }
  0xdb   : > { %vm572_vm10 = vcmp.gt.f32.partialorder %v1489_v48, 0.0  ;;  %vm571_vm11 = vcmp.gt.f32.partialorder %v1488_v50, 0.0 }
  0xdc   : > { %v574_v52 = vsel %vm572_vm10, -1e+30, %v1728_v22  ;;  %1491 = vmatpush.msk.msrb.mxu2 %vm474_vm8, %v1651_v49  ;;  %v573_v53 = vsel %vm571_vm11, -1e+30, %v1724_v20 }
  0xdd   : > { %v576_v54 = vsel %vm300_vm0, %v574_v52, -inf  ;;  %v575_v55 = vsel %vm300_vm0, %v573_v53, -inf  ;;  %1492 = vmatmul.msk.f32.vlgmr.msrb.gmra.mxu2 %vm482_vm9, %v1752_v51 }
  0xde   : > { %v577_v56 = vmax.f32 %v575_v55, %v576_v54 }
  0xe0   : > { %v578_v57 = vrot.slane %v577_v56, 4 }
  0xe2   : > { %v579_v58 = vmax.f32 %v577_v56, %v578_v57 }
  0xe4   : > { %v580_v60 = vrot.slane %v579_v58, 2 }
  0xe6   : > { %v581_v63 = vmax.f32 %v579_v58, %v580_v60  ;;  %v1616_v60 = vld [vmem:[%s2228_s3 + $0x8] sm:$0xff] }
  0xe7   : > { %1486 = vmatmul.msk.bf16.gmra.mxu1 %vm389_vm5, %v1616_v60 }
  0xe8   : > { %v582_v2 = vrot.slane %v581_v63, 1 }
  0xea   : > { %v583_v3 = vmax.f32 %v581_v63, %v582_v2 }
  0xec   : > { %vm584_vm3 = vcmp.eq.f32.partialorder %v573_v53, %v583_v3  ;;  %vm585_vm4 = vcmp.eq.f32.partialorder %v574_v52, %v583_v3 }
  0xed   : > { %v586_v7 = vsel %vm584_vm3, %v1732_v33, 16.0  ;;  %v587_v8 = vsel %vm585_vm4, %v1734_v34, 16.0 }
  0xee   : > { %v588_v10 = vsel %vm300_vm0, %v586_v7, inf  ;;  %v589_v11 = vsel %vm300_vm0, %v587_v8, inf  ;;  %v1617_v8 = vld [vmem:[%s2228_s3 + $0x10] sm:$0xff] }
  0xef   : > { %v590_v12 = vmin.f32 %v588_v10, %v589_v11 }
  0xf1   : > { %v591_v13 = vrot.slane %v590_v12, 4 }
  0xf3   : > { %v592_v14 = vmin.f32 %v590_v12, %v591_v13 }
  0xf5   : > { %v593_v15 = vrot.slane %v592_v14, 2 }
  0xf7   : > { %v594_v16 = vmin.f32 %v592_v14, %v593_v15  ;;  %1487 = vmatmul.msk.bf16.gmra.mxu1 %vm389_vm5, %v1617_v8 }
  0xf9   : > { %v595_v17 = vrot.slane %v594_v16, 1 }
  0xfb   : > { %v596_v18 = vmin.f32 %v594_v16, %v595_v17 }
  0xfd   : > { %vm598_vm6 = vcmp.eq.f32.partialorder %v1734_v34, %v596_v18  ;;  %vm597_vm7 = vcmp.eq.f32.partialorder %v1732_v33, %v596_v18 }
  0xfe   : > { %v1513_v19 = vsel %vm598_vm6, 1.0, %v1650_v47  ;;  %1514 = vmatpush.msk.msra.mxu2 %vm598_vm6, %v1651_v49  ;;  %v1512_v21 = vsel %vm597_vm7, 1.0, %v1650_v47 }
  0xff   : > { %v603_v23 = vadd.f32 %v1512_v21, %v1488_v50  ;;  %v604_v24 = vadd.f32 %v1513_v19, %v1489_v48 }
 0x100   : > { %1515 = vmatpush.msk.msra.mxu2 %vm597_vm7, %v1651_v49 }
 0x101   : > { %vm672_vm8 = vcmp.gt.f32.partialorder %v603_v23, 0.0  ;;  %1516 = vmatmul.msk.f32.vlgmr.msra.gmra.mxu2 %vm482_vm9, %v1752_v51  ;;  %vm673_vm10 = vcmp.gt.f32.partialorder %v604_v24, 0.0 }
 0x102   : > { %v674_v25 = vsel %vm672_vm8, -1e+30, %v1724_v20  ;;  %v675_v26 = vsel %vm673_vm10, -1e+30, %v1728_v22 }
 0x103   : > { %v676_v27 = vsel %vm300_vm0, %v674_v25, -inf  ;;  %v677_v28 = vsel %vm300_vm0, %v675_v26, -inf }
 0x104   : > { %v678_v29 = vmax.f32 %v676_v27, %v677_v28 }
 0x106   : > { %v679_v30 = vrot.slane %v678_v29, 4 }
 0x108   : > { %v680_v31 = vmax.f32 %v678_v29, %v679_v30 }
 0x10a   : > { %v681_v32 = vrot.slane %v680_v31, 2 }
 0x10c   : > { %v682_v35 = vmax.f32 %v680_v31, %v681_v32 }
 0x10e   : > { %v683_v36 = vrot.slane %v682_v35, 1 }
 0x110   : > { %v684_v37 = vmax.f32 %v682_v35, %v683_v36 }
 0x112   : > { %vm685_vm11 = vcmp.eq.f32.partialorder %v674_v25, %v684_v37  ;;  %vm686_vm14 = vcmp.eq.f32.partialorder %v675_v26, %v684_v37 }
 0x113   : > { %v687_v38 = vsel %vm685_vm11, %v1732_v33, 16.0  ;;  %v688_v39 = vsel %vm686_vm14, %v1734_v34, 16.0 }
 0x114   : > { %v689_v40 = vsel %vm300_vm0, %v687_v38, inf  ;;  %v690_v41 = vsel %vm300_vm0, %v688_v39, inf }
 0x115   : > { %v691_v42 = vmin.f32 %v689_v40, %v690_v41 }
 0x117   : > { %v692_v43 = vrot.slane %v691_v42, 4 }
 0x119   : > { %v693_v44 = vmin.f32 %v691_v42, %v692_v43 }
 0x11b   : > { %v694_v45 = vrot.slane %v693_v44, 2 }
 0x11d   : > { %v695_v46 = vmin.f32 %v693_v44, %v694_v45 }
 0x11f   : > { %v696_v48 = vrot.slane %v695_v46, 1 }
 0x121   : > { %v1794_v50 = vmin.f32 %v695_v46, %v696_v48 }
 0x123   : > { %vm698_vm15 = vcmp.eq.f32.partialorder %v1732_v33, %v1794_v50  ;;  %vm699_vm1 = vcmp.eq.f32.partialorder %v1734_v34, %v1794_v50  ;;  %v1978_v50 = vld [vmem:[%s2229_s4 + $0x8] sm:$0xff] }
 0x124   : > { %v1524_v52 = vsel %vm698_vm15, 1.0, %v1650_v47  ;;  %v1525_v53 = vsel %vm699_vm1, 1.0, %v1650_v47 }
 0x125   : > { %v704_v54 = vadd.f32 %v1524_v52, %v603_v23  ;;  %v705_v55 = vadd.f32 %v1525_v53, %v604_v24 }
 0x127   : > { %vm773_vm3 = vcmp.gt.f32.partialorder %v704_v54, 0.0  ;;  %vm774_vm4 = vcmp.gt.f32.partialorder %v705_v55, 0.0 }
 0x128   : > { %v775_v56 = vsel %vm773_vm3, -1e+30, %v1724_v20  ;;  %v776_v57 = vsel %vm774_vm4, -1e+30, %v1728_v22 }
 0x129   : > { %v777_v58 = vsel %vm300_vm0, %v775_v56, -inf  ;;  %v778_v59 = vsel %vm300_vm0, %v776_v57, -inf }
 0x12a   : > { %v779_v61 = vmax.f32 %v777_v58, %v778_v59 }
 0x12c   : > { %v780_v62 = vrot.slane %v779_v61, 4 }
 0x12e   : > { %v781_v63 = vmax.f32 %v779_v61, %v780_v62 }
 0x130   : > { %v782_v1 = vrot.slane %v781_v63, 2 }
 0x132   : > { %v783_v2 = vmax.f32 %v781_v63, %v782_v1 }
 0x134   : > { %v784_v3 = vrot.slane %v783_v2, 1 }
 0x136   : > { %v785_v4 = vmax.f32 %v783_v2, %v784_v3 }
 0x138   : > { %vm786_vm6 = vcmp.eq.f32.partialorder %v775_v56, %v785_v4  ;;  %vm787_vm7 = vcmp.eq.f32.partialorder %v776_v57, %v785_v4 }
 0x139   : > { %v788_v6 = vsel %vm786_vm6, %v1732_v33, 16.0  ;;  %v789_v7 = vsel %vm787_vm7, %v1734_v34, 16.0 }
 0x13a   : > { %v790_v9 = vsel %vm300_vm0, %v788_v6, inf  ;;  %v791_v10 = vsel %vm300_vm0, %v789_v7, inf }
 0x13b   : > { %v792_v11 = vmin.f32 %v790_v9, %v791_v10 }
 0x13d   : > { %v793_v12 = vrot.slane %v792_v11, 4 }
 0x13f   : > { %v794_v13 = vmin.f32 %v792_v11, %v793_v12 }
 0x141   : > { %v795_v14 = vrot.slane %v794_v13, 2 }
 0x143   : > { %v796_v15 = vmin.f32 %v794_v13, %v795_v14 }
 0x145   : > { %v797_v16 = vrot.slane %v796_v15, 1 }
 0x147   : > { %v798_v17 = vmin.f32 %v796_v15, %v797_v16 }
 0x149   : > { %vm800_vm8 = vcmp.eq.f32.partialorder %v1734_v34, %v798_v17  ;;  %vm799_vm10 = vcmp.eq.f32.partialorder %v1732_v33, %v798_v17 }
 0x14a   : > { %v1537_v18 = vsel %vm800_vm8, 1.0, %v1650_v47  ;;  %1538 = vmatpush.msk.msrb.mxu1 %vm800_vm8, %v1651_v49  ;;  %v1536_v19 = vsel %vm799_vm10, 1.0, %v1650_v47 }
 0x14b   : > { %v806_v21 = vadd.f32 %v1537_v18, %v705_v55  ;;  %v805_v23 = vadd.f32 %v1536_v19, %v704_v54 }
 0x14c   : > { %1539 = vmatpush.msk.msrb.mxu1 %vm799_vm10, %v1651_v49 }
 0x14d   : > { %vm875_vm11 = vcmp.gt.f32.partialorder %v806_v21, 0.0  ;;  %vm874_vm14 = vcmp.gt.f32.partialorder %v805_v23, 0.0  ;;  %1540 = vmatmul.msk.f32.vlgmr.msrb.gmra.mxu1 %vm482_vm9, %v1752_v51 }
 0x14e   : > { %v877_v24 = vsel %vm875_vm11, -1e+30, %v1728_v22  ;;  %v876_v25 = vsel %vm874_vm14, -1e+30, %v1724_v20 }
 0x14f   : > { %v879_v26 = vsel %vm300_vm0, %v877_v24, -inf  ;;  %v878_v27 = vsel %vm300_vm0, %v876_v25, -inf }
 0x150   : > { %v880_v28 = vmax.f32 %v878_v27, %v879_v26 }
 0x152   : > { %v881_v29 = vrot.slane %v880_v28, 4 }
 0x154   : > { %v882_v30 = vmax.f32 %v880_v28, %v881_v29 }
 0x156   : > { %v883_v31 = vrot.slane %v882_v30, 2 }
 0x158   : > { %v884_v32 = vmax.f32 %v882_v30, %v883_v31 }
 0x15a   : > { %v885_v35 = vrot.slane %v884_v32, 1 }
 0x15c   : > { %v886_v36 = vmax.f32 %v884_v32, %v885_v35 }
 0x15e   : > { %vm887_vm3 = vcmp.eq.f32.partialorder %v876_v25, %v886_v36  ;;  %vm888_vm4 = vcmp.eq.f32.partialorder %v877_v24, %v886_v36  ;;  %v412_v36 = vpop.f32.mrf.mxu1 }
 0x15f   : > { %v889_v37 = vsel %vm887_vm3, %v1732_v33, 16.0  ;;  %v890_v38 = vsel %vm888_vm4, %v1734_v34, 16.0 }
 0x160   : > { %v891_v39 = vsel %vm300_vm0, %v889_v37, inf  ;;  %v892_v40 = vsel %vm300_vm0, %v890_v38, inf  ;;  %v1852_v62 = vpop.f32.mrf.mxu2 }
 0x161   : > { %v893_v41 = vmin.f32 %v891_v39, %v892_v40 }
 0x163   : > { %v894_v42 = vrot.slane %v893_v41, 4 }
 0x165   : > { %v895_v43 = vmin.f32 %v893_v41, %v894_v42 }
 0x167   : > { %v896_v44 = vrot.slane %v895_v43, 2 }
 0x169   : > { %v897_v45 = vmin.f32 %v895_v43, %v896_v44  ;;  %v414_v44 = vpop.f32.mrf.mxu1 }
 0x16b   : > { %v898_v46 = vrot.slane %v897_v45, 1 }
 0x16d   : > { %v899_v48 = vmin.f32 %v897_v45, %v898_v46 }
 0x16f   : > { %vm901_vm6 = vcmp.eq.f32.partialorder %v1734_v34, %v899_v48  ;;  %vm900_vm7 = vcmp.eq.f32.partialorder %v1732_v33, %v899_v48 }
 0x170   : > { %v1549_v52 = vsel %vm901_vm6, 1.0, %v1650_v47  ;;  %1550 = vmatpush.msk.msra.mxu1 %vm901_vm6, %v1651_v49  ;;  %v1548_v53 = vsel %vm900_vm7, 1.0, %v1650_v47 }
 0x171   : > { %v906_v54 = vadd.f32 %v1548_v53, %v805_v23  ;;  %v907_v55 = vadd.f32 %v1549_v52, %v806_v21 }
 0x172   : > { %1551 = vmatpush.msk.msra.mxu1 %vm900_vm7, %v1651_v49 }
 0x173   : > { %vm975_vm8 = vcmp.gt.f32.partialorder %v906_v54, 0.0  ;;  %1552 = vmatmul.msk.f32.vlgmr.msra.gmra.mxu1 %vm482_vm9, %v1752_v51  ;;  %vm976_vm10 = vcmp.gt.f32.partialorder %v907_v55, 0.0 }
 0x174   : > { %v977_v56 = vsel %vm975_vm8, -1e+30, %v1724_v20  ;;  %v978_v57 = vsel %vm976_vm10, -1e+30, %v1728_v22 }
 0x175   : > { %v979_v58 = vsel %vm300_vm0, %v977_v56, -inf  ;;  %v980_v59 = vsel %vm300_vm0, %v978_v57, -inf }
 0x176   : > { %v981_v60 = vmax.f32 %v979_v58, %v980_v59 }
 0x178   : > { %v982_v61 = vrot.slane %v981_v60, 4 }
 0x17a   : > { %v983_v63 = vmax.f32 %v981_v60, %v982_v61 }
 0x17c   : > { %v984_v1 = vrot.slane %v983_v63, 2 }
 0x17e   : > { %v985_v2 = vmax.f32 %v983_v63, %v984_v1 }
 0x180   : > { %v986_v3 = vrot.slane %v985_v2, 1 }
 0x182   : > { %v987_v4 = vmax.f32 %v985_v2, %v986_v3 }
 0x184   : > { %v622_v6 = vpop.f32.mrf.mxu2  ;;  %vm988_vm11 = vcmp.eq.f32.partialorder %v977_v56, %v987_v4  ;;  %vm989_vm14 = vcmp.eq.f32.partialorder %v978_v57, %v987_v4 }
 0x185   : > { %v1855_v7 = vsub.f32 %v622_v6, %v1708_v0  ;;  %v990_v8 = vsel %vm988_vm11, %v1732_v33, 16.0  ;;  %v991_v9 = vsel %vm989_vm14, %v1734_v34, 16.0 }
 0x186   : > { %v992_v10 = vsel %vm300_vm0, %v990_v8, inf  ;;  %v993_v11 = vsel %vm300_vm0, %v991_v9, inf }
 0x187   : > { %631 = vrot.lane.b32.xlu1 %v1855_v7, %s1648_s7  ;;  %v994_v12 = vmin.f32 %v992_v10, %v993_v11 }
 0x189   : > { %v995_v13 = vrot.slane %v994_v12, 4 }
 0x18b   : > { %v996_v14 = vmin.f32 %v994_v12, %v995_v13 }
 0x18d   : > { %v997_v15 = vrot.slane %v996_v14, 2 }
 0x18f   : > { %627 = vrot.lane.b32.xlu1 %v1855_v7, %s1649_s8  ;;  %v998_v16 = vmin.f32 %v996_v14, %v997_v15 }
 0x191   : > { %v999_v17 = vrot.slane %v998_v16, 1 }
 0x193   : > { %v1000_v18 = vmin.f32 %v998_v16, %v999_v17 }
 0x195   : > { %vm1002_vm3 = vcmp.eq.f32.partialorder %v1734_v34, %v1000_v18  ;;  %vm1001_vm4 = vcmp.eq.f32.partialorder %v1732_v33, %v1000_v18 }
 0x196   : > { %v1561_v19 = vsel %vm1002_vm3, 1.0, %v1650_v47  ;;  %1562 = vmatpush.msk.msrb.mxu1 %vm1002_vm3, %v1651_v49  ;;  %v1560_v21 = vsel %vm1001_vm4, 1.0, %v1650_v47 }
 0x197   : > { %v1008_v23 = vadd.f32 %v1561_v19, %v907_v55  ;;  %v1007_v24 = vadd.f32 %v1560_v21, %v906_v54  ;;  %v417_v54 = vpop.f32.mrf.mxu1 }
 0x198   : > { %1563 = vmatpush.msk.msrb.mxu1 %vm1001_vm4, %v1651_v49  ;;  %v1897_v19 = vadd.f32 %v417_v54, %v412_v36 }
 0x199   : > { %vm1077_vm6 = vcmp.gt.f32.partialorder %v1008_v23, 0.0  ;;  %vm1076_vm7 = vcmp.gt.f32.partialorder %v1007_v24, 0.0  ;;  %1564 = vmatmul.msk.f32.vlgmr.msrb.gmra.mxu1 %vm482_vm9, %v1752_v51 }
 0x19a   : > { %v1079_v25 = vsel %vm1077_vm6, -1e+30, %v1728_v22  ;;  %v1078_v26 = vsel %vm1076_vm7, -1e+30, %v1724_v20 }
 0x19b   : > { %v1080_v27 = vsel %vm300_vm0, %v1078_v26, -inf  ;;  %v1081_v28 = vsel %vm300_vm0, %v1079_v25, -inf }
 0x19c   : > { %v1082_v29 = vmax.f32 %v1080_v27, %v1081_v28 }
 0x19e   : > { %v1083_v30 = vrot.slane %v1082_v29, 4 }
 0x19f   : > { %v419_v3 = vpop.f32.mrf.mxu1 }
 0x1a0   : > { %v1084_v31 = vmax.f32 %v1082_v29, %v1083_v30  ;;  %v1899_v21 = vadd.f32 %v419_v3, %v414_v44 }
 0x1a2   : > { %v1085_v32 = vrot.slane %v1084_v31, 2 }
 0x1a4   : > { %v1086_v35 = vmax.f32 %v1084_v31, %v1085_v32 }
 0x1a6   : > { %v1087_v37 = vrot.slane %v1086_v35, 1 }
 0x1a7   : > { %v422_v11 = vpop.f32.mrf.mxu1 }
 0x1a8   : > { %v1088_v38 = vmax.f32 %v1086_v35, %v1087_v37  ;;  %v1907_v28 = vadd.f32 %v422_v11, %v417_v54 }
 0x1aa   : > { %vm1089_vm8 = vcmp.eq.f32.partialorder %v1078_v26, %v1088_v38  ;;  %vm1090_vm10 = vcmp.eq.f32.partialorder %v1079_v25, %v1088_v38  ;;  %v1902_v25 = vadd.f32 %v1897_v19, %v422_v11 }
 0x1ab   : > { %v1091_v39 = vsel %vm1089_vm8, %v1732_v33, 16.0  ;;  %v1092_v40 = vsel %vm1090_vm10, %v1734_v34, 16.0 }
 0x1ac   : > { %v1093_v41 = vsel %vm300_vm0, %v1091_v39, inf  ;;  %v1094_v42 = vsel %vm300_vm0, %v1092_v40, inf }
 0x1ad   : > { %v1095_v43 = vmin.f32 %v1093_v41, %v1094_v42 }
 0x1af   : > { %v1096_v45 = vrot.slane %v1095_v43, 4 }
 0x1b1   : > { %v1097_v46 = vmin.f32 %v1095_v43, %v1096_v45 }
 0x1b3   : > { %v1098_v48 = vrot.slane %v1097_v46, 2 }
 0x1b5   : > { %v1099_v52 = vmin.f32 %v1097_v46, %v1098_v48 }
 0x1b7   : > { %v1100_v53 = vrot.slane %v1099_v52, 1 }
 0x1b9   : > { %v1101_v55 = vmin.f32 %v1099_v52, %v1100_v53 }
 0x1bb   : > { %vm1103_vm11 = vcmp.eq.f32.partialorder %v1734_v34, %v1101_v55  ;;  %vm1102_vm14 = vcmp.eq.f32.partialorder %v1732_v33, %v1101_v55 }
 0x1bc   : > { %v1573_v56 = vsel %vm1103_vm11, 1.0, %v1650_v47  ;;  %1574 = vmatpush.msk.msra.mxu1 %vm1103_vm11, %v1651_v49  ;;  %v1572_v57 = vsel %vm1102_vm14, 1.0, %v1650_v47 }
 0x1bd   : > { %v1109_v58 = vadd.f32 %v1573_v56, %v1008_v23  ;;  %v1108_v59 = vadd.f32 %v1572_v57, %v1007_v24  ;;  %v424_v23 = vpop.f32.mrf.mxu1 }
 0x1be   : > { %1575 = vmatpush.msk.msra.mxu1 %vm1102_vm14, %v1651_v49  ;;  %v1905_v26 = vadd.f32 %v1899_v21, %v424_v23  ;;  %v1909_v29 = vadd.f32 %v424_v23, %v419_v3  ;;  %v1948_v3 = vld [vmem:[%s2229_s4 + $0x10] sm:$0xff] }
 0x1bf   : > { %vm1178_vm3 = vcmp.gt.f32.partialorder %v1109_v58, 0.0  ;;  %vm1177_vm4 = vcmp.gt.f32.partialorder %v1108_v59, 0.0  ;;  %1576 = vmatmul.msk.f32.vlgmr.msra.gmra.mxu1 %vm482_vm9, %v1752_v51 }
 0x1c0   : > { %v1180_v60 = vsel %vm1178_vm3, -1e+30, %v1728_v22  ;;  %v1179_v61 = vsel %vm1177_vm4, -1e+30, %v1724_v20 }
 0x1c1   : > { %v1181_v63 = vsel %vm300_vm0, %v1179_v61, -inf  ;;  %v1182_v1 = vsel %vm300_vm0, %v1180_v60, -inf }
 0x1c2   : > { %v1183_v2 = vmax.f32 %v1181_v63, %v1182_v1 }
 0x1c4   : > { %v1184_v4 = vrot.slane %v1183_v2, 4 }
 0x1c6   : > { %v1185_v6 = vmax.f32 %v1183_v2, %v1184_v4 }
 0x1c8   : > { %v1186_v8 = vrot.slane %v1185_v6, 2 }
 0x1ca   : > { %v1187_v9 = vmax.f32 %v1185_v6, %v1186_v8  ;;  %v824_v41 = vpop.f32.mrf.mxu1 }
 0x1cc   : > { %v1188_v10 = vrot.slane %v1187_v9, 1 }
 0x1ce   : > { %v1189_v12 = vmax.f32 %v1187_v9, %v1188_v10  ;;  %v1986_v9 = vsub.f32 %v824_v41, %v1708_v0 }
 0x1d0   : > { %vm1190_vm6 = vcmp.eq.f32.partialorder %v1179_v61, %v1189_v12  ;;  %vm1191_vm7 = vcmp.eq.f32.partialorder %v1180_v60, %v1189_v12 }
 0x1d1   : > { %v1192_v13 = vsel %vm1190_vm6, %v1732_v33, 16.0  ;;  %v1193_v14 = vsel %vm1191_vm7, %v1734_v34, 16.0 }
 0x1d2   : > { %v1194_v15 = vsel %vm300_vm0, %v1192_v13, inf  ;;  %v1195_v16 = vsel %vm300_vm0, %v1193_v14, inf }
 0x1d3   : > { %v1196_v17 = vmin.f32 %v1194_v15, %v1195_v16 }
 0x1d5   : > { %v1197_v18 = vrot.slane %v1196_v17, 4 }
 0x1d7   : > { %v1198_v24 = vmin.f32 %v1196_v17, %v1197_v18 }
 0x1d9   : > { %v1199_v27 = vrot.slane %v1198_v24, 2 }
 0x1db   : > { %v1200_v30 = vmin.f32 %v1198_v24, %v1199_v27 }
 0x1dd   : > { %v1201_v31 = vrot.slane %v1200_v30, 1 }
 0x1df   : > { %v1911_v32 = vmin.f32 %v1200_v30, %v1201_v31 }
 0x1e1   : > { %vm1203_vm8 = vcmp.eq.f32.partialorder %v1732_v33, %v1911_v32  ;;  %vm1204_vm10 = vcmp.eq.f32.partialorder %v1734_v34, %v1911_v32 }
 0x1e2   : > { %v1584_v35 = vsel %vm1203_vm8, 1.0, %v1650_v47  ;;  %v1585_v36 = vsel %vm1204_vm10, 1.0, %v1650_v47 }
 0x1e3   : > { %v1209_v37 = vadd.f32 %v1584_v35, %v1108_v59  ;;  %v1210_v38 = vadd.f32 %v1585_v36, %v1109_v58 }
 0x1e5   : > { %vm1278_vm11 = vcmp.gt.f32.partialorder %v1209_v37, 0.0  ;;  %vm1279_vm14 = vcmp.gt.f32.partialorder %v1210_v38, 0.0 }
 0x1e6   : > { %v1280_v39 = vsel %vm1278_vm11, -1e+30, %v1724_v20  ;;  %v1281_v40 = vsel %vm1279_vm14, -1e+30, %v1728_v22  ;;  %v1934_v22 = vsub.f32 %v1852_v62, %v1708_v0 }
 0x1e7   : > { %v1282_v42 = vsel %vm300_vm0, %v1280_v39, -inf  ;;  %v1283_v43 = vsel %vm300_vm0, %v1281_v40, -inf }
 0x1e8   : > { %v1284_v44 = vmax.f32 %v1282_v42, %v1283_v43 }
 0x1ea   : > { %v1285_v45 = vrot.slane %v1284_v44, 4 }
 0x1ec   : > { %v1286_v46 = vmax.f32 %v1284_v44, %v1285_v45 }
 0x1ee   : > { %v1287_v48 = vrot.slane %v1286_v46, 2 }
 0x1f0   : > { %v1288_v52 = vmax.f32 %v1286_v46, %v1287_v48  ;;  %v925_v53 = vpop.f32.mrf.mxu1 }
 0x1f1   : > { %v928_v47 = vsub.f32 %v925_v53, %v1708_v0 }
 0x1f2   : > { %v1289_v54 = vrot.slane %v1288_v52, 1 }
 0x1f3   : > { %930 = vrot.lane.b32.xlu1 %v928_v47, %s1649_s8  ;;  %934 = vrot.lane.b32.xlu0 %v928_v47, %s1648_s7 }
 0x1f4   : > { %v1290_v20 = vmax.f32 %v1288_v52, %v1289_v54 }
 0x1f6   : > { %vm1291_vm3 = vcmp.eq.f32.partialorder %v1280_v39, %v1290_v20  ;;  %vm1292_vm4 = vcmp.eq.f32.partialorder %v1281_v40, %v1290_v20 }
 0x1f7   : > { %v1293_v55 = vsel %vm1291_vm3, %v1732_v33, 16.0  ;;  %v1294_v56 = vsel %vm1292_vm4, %v1734_v34, 16.0 }
 0x1f8   : > { %v1295_v57 = vsel %vm300_vm0, %v1293_v55, inf  ;;  %v1296_v58 = vsel %vm300_vm0, %v1294_v56, inf }
 0x1f9   : > { %v1297_v59 = vmin.f32 %v1295_v57, %v1296_v58  ;;  %v632_v60 = vpop.permute.xlu1 %631 }
 0x1fa   : > { %v634_v61 = vsel %vm364_vm12, %v632_v60, 0.0 }
 0x1fb   : > { %v636_v63 = vpack.c.bf16 %v634_v61, %v634_v61  ;;  %508 = vrot.lane.b32.xlu0 %v1934_v22, %s1649_s8  ;;  %v1298_v10 = vrot.slane %v1297_v59, 4 }
 0x1fd   : > { %v638_v1 = vsel %vm399_vm13, %v636_v63, 0  ;;  %v1299_v11 = vmin.f32 %v1297_v59, %v1298_v10 }
 0x1fe   : > { %1619 = vmatpush.bf16.msrb.mxu2 %v638_v1  ;;  %646 = vmatpush.bf16.msrb.mxu0 %v638_v1 }
 0x1ff   : > { %v1300_v13 = vrot.slane %v1299_v11, 2 }
 0x201   : > { %v628_v62 = vpop.permute.xlu1 %627  ;;  %v1301_v14 = vmin.f32 %v1299_v11, %v1300_v13 }
 0x202   : > { %v1519_v2 = vpack.c.bf16 %v1855_v7, %v628_v62  ;;  %v1969_v7 = vld [vmem:[%s2229_s4] sm:$0xff] }
 0x203   : > { %v1302_v17 = vrot.slane %v1301_v14, 1 }
 0x204   : > { %1620 = vmatpush.bf16.msk.msrb.mxu2 %vm1763_vm2, %v1519_v2  ;;  %1520 = vmatpush.bf16.msk.msrb.mxu0 %vm1763_vm2, %v1519_v2 }
 0x205   : > { %v1303_v27 = vmin.f32 %v1301_v14, %v1302_v17 }
 0x207   : > { %1523 = vmatmul.msk.bf16.vlgmr.msrb.gmra.mxu2 %vm389_vm5, %v1948_v3  ;;  %1521 = vmatmul.msk.bf16.vlgmr.msrb.gmra.mxu0 %vm389_vm5, %v1969_v7 }
 0x208   : > { %1526 = vmatpush.msk.msra.mxu2 %vm699_vm1, %v1651_v49  ;;  %vm1304_vm1 = vcmp.eq.f32.partialorder %v1732_v33, %v1303_v27 }
 0x20a   : > { %1527 = vmatpush.msk.msra.mxu2 %vm698_vm15, %v1651_v49  ;;  %vm1305_vm15 = vcmp.eq.f32.partialorder %v1734_v34, %v1303_v27 }
 0x216   : > { %v1026_v4 = vpop.f32.mrf.mxu1 }
 0x217   : > { %1528 = vmatmul.msk.f32.vlgmr.msra.gmra.mxu2 %vm482_vm9, %v1752_v51  ;;  %1522 = vmatmul.msk.bf16.gmra.mxu0 %vm389_vm5, %v1978_v50  ;;  %v1991_v12 = vsub.f32 %v1026_v4, %v1708_v0 }
 0x23c   : > { %v1127_v6 = vpop.f32.mrf.mxu1 }
 0x23d   : > { %v1130_v8 = vsub.f32 %v1127_v6, %v1708_v0 }
 0x23f   : > { %1136 = vrot.lane.b32.xlu2 %v1130_v8, %s1648_s7 }
 0x247   : > { %1132 = vrot.lane.b32.xlu2 %v1130_v8, %s1649_s8 }
 0x24f   : > { %512 = vrot.lane.b32.xlu2 %v1934_v22, %s1648_s7 }
 0x257   : > { %833 = vrot.lane.b32.xlu2 %v1986_v9, %s1648_s7 }
 0x25f   : > { %1035 = vrot.lane.b32.xlu2 %v1991_v12, %s1648_s7 }
 0x265   : > { %v935_v15 = vpop.permute.xlu0 %934  ;;  %v931_v23 = vpop.permute.xlu1 %930 }
 0x266   : > { %v937_v16 = vsel %vm364_vm12, %v935_v15, 0.0  ;;  %v1555_v30 = vpack.c.bf16 %v928_v47, %v931_v23  ;;  %v1653_v23 = vmov 0  }
 0x267   : > { %v939_v18 = vpack.c.bf16 %v937_v16, %v937_v16  ;;  %1635 = vset.pattern.permute.xlu2 %v1653_v23  ;;  %1636 = vset.pattern.permute.xlu0 %v1653_v23 }
 0x269   : > { %v941_v24 = vsel %vm399_vm13, %v939_v18, 0 }
 0x26a   : > { %949 = vmatpush.bf16.msra.mxu0 %v941_v24 }
 0x26d   : > { %v509_v48 = vpop.permute.xlu0 %508 }
 0x26e   : > { %1556 = vmatpush.bf16.msk.msra.mxu0 %vm1763_vm2, %v1555_v30  ;;  %v1507_v34 = vpack.c.bf16 %v1934_v22, %v509_v48 }
 0x271   : > { %1557 = vmatmul.msk.bf16.vlgmr.msra.gmra.mxu0 %vm389_vm5, %v1969_v7 }
 0x272   : > { %1598 = vmatpush.msk.msrb.mxu0 %vm1305_vm15, %v1651_v49 }
 0x274   : > { %1599 = vmatpush.msk.msrb.mxu0 %vm1304_vm1, %v1651_v49 }
 0x281   : > { %1558 = vmatmul.msk.bf16.gmra.mxu0 %vm389_vm5, %v1978_v50 }
 0x284   : > { %v2049_v32 = vpop.f32.mrf.mxu0 }
 0x28a   : > { %v2007_v31 = vpop.f32.mrf.mxu2 }
 0x28c   : > { %v2053_v54 = vpop.f32.mrf.mxu0 }
 0x291   : > { %1559 = vmatmul.msk.bf16.gmra.mxu0 %vm389_vm5, %v1948_v3 }
 0x292   : > { %v2011_v35 = vpop.f32.mrf.mxu2 }
 0x294   : > { %v2059_v20 = vpop.f32.mrf.mxu0 }
 0x299   : > { %v1137_v36 = vpop.permute.xlu2 %1136 }
 0x29a   : > { %v1139_v37 = vsel %vm364_vm12, %v1137_v36, 0.0  ;;  %v723_v38 = vpop.f32.mrf.mxu2 }
 0x29b   : > { %v1141_v39 = vpack.c.bf16 %v1139_v37, %v1139_v37  ;;  %v726_v40 = vsub.f32 %v723_v38, %v1708_v0  ;;  %v1639_v38 = vld [vmem:[%s1705_s26] sm:$0xff] }
 0x29c   : > { %v2061_v22 = vpop.f32.mrf.mxu0 }
 0x29d   : > { %v1143_v41 = vsel %vm399_vm13, %v1141_v39, 0  ;;  %732 = vrot.lane.b32.xlu1 %v726_v40, %s1648_s7  ;;  %728 = vrot.lane.b32.xlu0 %v726_v40, %s1649_s8 }
 0x29e   : > { %1151 = vmatpush.bf16.msrb.mxu1 %v1143_v41  ;;  %v291_v41 = vld [vmem:[%s2230_s5] sm:$0xff] }
 0x2a1   : > { %v1133_v42 = vpop.permute.xlu2 %1132  ;;  %1600 = vmatmul.msk.f32.vlgmr.msrb.gmra.mxu0 %vm482_vm9, %v1752_v51 }
 0x2a2   : > { %v1579_v43 = vpack.c.bf16 %v1130_v8, %v1133_v42 }
 0x2a4   : > { %1580 = vmatpush.bf16.msk.msrb.mxu1 %vm1763_vm2, %v1579_v43  ;;  %v292_v43 = vld [vmem:[%s2230_s5 + $0x8] sm:$0xff] }
 0x2a5   : > { %829 = vrot.lane.b32.xlu1 %v1986_v9, %s1649_s8 }
 0x2a7   : > { %1581 = vmatmul.msk.bf16.vlgmr.msrb.gmra.mxu1 %vm389_vm5, %v1969_v7 }
 0x2a8   : > { %1586 = vmatpush.msk.msra.mxu1 %vm1204_vm10, %v1651_v49 }
 0x2a9   : > { %v513_v44 = vpop.permute.xlu2 %512 }
 0x2aa   : > { %1587 = vmatpush.msk.msra.mxu1 %vm1203_vm8, %v1651_v49  ;;  %v515_v45 = vsel %vm364_vm12, %v513_v44, 0.0 }
 0x2ab   : > { %v517_v46 = vpack.c.bf16 %v515_v45, %v515_v45 }
 0x2ad   : > { %1031 = vrot.lane.b32.xlu1 %v1991_v12, %s1649_s8  ;;  %v543_v52 = vsel %vm399_vm13, %v517_v46, 0 }
 0x2ae   : > { %551 = vmatpush.bf16.msra.mxu3 %v543_v52 }
 0x2b1   : > { %v834_v53 = vpop.permute.xlu2 %833 }
 0x2b2   : > { %v836_v47 = vsel %vm364_vm12, %v834_v53, 0.0  ;;  %1508 = vmatpush.bf16.msk.msra.mxu3 %vm1763_vm2, %v1507_v34 }
 0x2b3   : > { %v838_v33 = vpack.c.bf16 %v836_v47, %v836_v47 }
 0x2b5   : > { %v840_v49 = vsel %vm399_vm13, %v838_v33, 0  ;;  %1509 = vmatmul.msk.bf16.vlgmr.msra.gmra.mxu3 %vm389_vm5, %v1969_v7 }
 0x2b6   : > { %848 = vmatpush.bf16.msrb.mxu3 %v840_v49 }
 0x2b7   : > { %1582 = vmatmul.msk.bf16.gmra.mxu1 %vm389_vm5, %v1978_v50 }
 0x2b9   : > { %v1036_v59 = vpop.permute.xlu2 %1035 }
 0x2c5   : > { %1510 = vmatmul.msk.bf16.gmra.mxu3 %vm389_vm5, %v1978_v50 }
 0x2c7   : > { %1583 = vmatmul.msk.bf16.gmra.mxu1 %vm389_vm5, %v1948_v3 }
 0x2d5   : > { %1511 = vmatmul.msk.bf16.gmra.mxu3 %vm389_vm5, %v1948_v3 }
 0x2d7   : > { %1588 = vmatmul.msk.f32.vlgmr.msra.gmra.mxu1 %vm482_vm9, %v1752_v51  ;;  %v1038_v51 = vsel %vm364_vm12, %v1036_v59, 0.0 }
 0x2d8   : > { %v1040_v4 = vpack.c.bf16 %v1038_v51, %v1038_v51 }
 0x2da   : > { %v1042_v11 = vsel %vm399_vm13, %v1040_v4, 0 }
 0x2ee   : > { %v2063_v55 = vpop.f32.mrf.mxu0 }
 0x2f6   : > { %v2065_v56 = vpop.f32.mrf.mxu0 }
 0x2fe   : > { %v2067_v57 = vpop.f32.mrf.mxu0 }
 0x306   : > { %v2069_v58 = vpop.f32.mrf.mxu0 }
 0x30e   : > { %v2071_v60 = vpop.f32.mrf.mxu0 }
 0x30f   : > { %v733_v61 = vpop.permute.xlu1 %732  ;;  %v729_v62 = vpop.permute.xlu0 %728 }
 0x310   : > { %v735_v63 = vsel %vm364_vm12, %v733_v61, 0.0  ;;  %v1531_v6 = vpack.c.bf16 %v726_v40, %v729_v62 }
 0x311   : > { %v737_v1 = vpack.c.bf16 %v735_v63, %v735_v63 }
 0x313   : > { %v739_v2 = vsel %vm399_vm13, %v737_v1, 0 }
 0x314   : > { %747 = vmatpush.bf16.msrb.mxu2 %v739_v2 }
 0x316   : > { %v2076_v8 = vpop.f32.mrf.mxu0 }
 0x317   : > { %v830_v10 = vpop.permute.xlu1 %829 }
 0x318   : > { %v1543_v13 = vpack.c.bf16 %v1986_v9, %v830_v10  ;;  %1532 = vmatpush.bf16.msk.msrb.mxu2 %vm1763_vm2, %v1531_v6 }
 0x31a   : > { %1544 = vmatpush.bf16.msk.msrb.mxu3 %vm1763_vm2, %v1543_v13 }
 0x31b   : > { %1533 = vmatmul.msk.bf16.vlgmr.msrb.gmra.mxu2 %vm389_vm5, %v1969_v7 }
 0x31c   : > { %1050 = vmatpush.bf16.msra.mxu2 %v1042_v11 }
 0x31d   : > { %1545 = vmatmul.msk.bf16.vlgmr.msrb.gmra.mxu3 %vm389_vm5, %v1969_v7 }
 0x31e   : > { %v1327_v14 = vpop.f32.mrf.mxu0 }
 0x31f   : > { %v2089_v15 = vsub.f32 %v1327_v14, %v1708_v0  ;;  %v1032_v16 = vpop.permute.xlu1 %1031 }
 0x320   : > { %v1567_v9 = vpack.c.bf16 %v1991_v12, %v1032_v16 }
 0x321   : > { %1332 = vrot.lane.b32.xlu1 %v2089_v15, %s1649_s8 }
 0x322   : > { %1568 = vmatpush.bf16.msk.msra.mxu2 %vm1763_vm2, %v1567_v9 }
 0x324   : > { %v2096_v17 = vpop.f32.mrf.mxu1 }
 0x32b   : > { %1534 = vmatmul.msk.bf16.gmra.mxu2 %vm389_vm5, %v1978_v50 }
 0x32c   : > { %v2100_v18 = vpop.f32.mrf.mxu1 }
 0x32d   : > { %1546 = vmatmul.msk.bf16.gmra.mxu3 %vm389_vm5, %v1978_v50 }
 0x334   : > { %v2104_v0 = vpop.f32.mrf.mxu1 }
 0x338   : > { %v554_v27 = vpop.f32.mrf.mxu3 }
 0x33b   : > { %1535 = vmatmul.msk.bf16.gmra.mxu2 %vm389_vm5, %v1948_v3 }
 0x33c   : > { %v2108_v12 = vpop.f32.mrf.mxu1 }
 0x33d   : > { %1547 = vmatmul.msk.bf16.gmra.mxu3 %vm389_vm5, %v1948_v3 }
 0x340   : > { %v2118_v36 = vpop.f32.mrf.mxu3 }
 0x344   : > { %v2112_v24 = vpop.f32.mrf.mxu1 }
 0x348   : > { %v559_v40 = vpop.f32.mrf.mxu3 }
 0x34b   : > { %1569 = vmatmul.msk.bf16.vlgmr.msra.gmra.mxu2 %vm389_vm5, %v1969_v7 }
 0x34c   : > { %v2116_v30 = vpop.f32.mrf.mxu1 }
 0x350   : > { %v561_v42 = vpop.f32.mrf.mxu3 }
 0x354   : > { %v1228_v37 = vpop.f32.mrf.mxu1 }
 0x355   : > { %v1231_v39 = vsub.f32 %v1228_v37, %v1639_v38 }
 0x357   : > { %1233 = vrot.lane.b32.xlu2 %v1231_v39, %s1649_s8  ;;  %1237 = vrot.lane.b32.xlu0 %v1231_v39, %s1648_s7 }
 0x358   : > { %v564_v44 = vpop.f32.mrf.mxu3 }
 0x35b   : > { %1570 = vmatmul.msk.bf16.gmra.mxu2 %vm389_vm5, %v1978_v50 }
 0x35f   : > { %433 = vperm.xlu2 %1635, %v291_v41   ;;  %1336 = vrot.lane.b32.xlu0 %v2089_v15, %s1648_s7 }
 0x360   : > { %v565_v45 = vpop.f32.mrf.mxu3 }
 0x367   : > { %438 = vperm.xlu0 %1636, %v292_v43  }
 0x36b   : > { %1571 = vmatmul.msk.bf16.gmra.mxu2 %vm389_vm5, %v1948_v3 }
 0x39e   : > { %v750_v46 = vpop.f32.mrf.mxu2 }
 0x3a0   : > { %v851_v48 = vpop.f32.mrf.mxu3 }
 0x3a6   : > { %v752_v52 = vpop.f32.mrf.mxu2 }
 0x3a8   : > { %v853_v34 = vpop.f32.mrf.mxu3 }
 0x3ae   : > { %v755_v53 = vpop.f32.mrf.mxu2 }
 0x3b0   : > { %v856_v47 = vpop.f32.mrf.mxu3 }
 0x3b1   : > { %v1234_v33 = vpop.permute.xlu2 %1233 }
 0x3b2   : > { %v1591_v45 = vpack.c.bf16 %v1231_v39, %v1234_v33 }
 0x3b6   : > { %v757_v49 = vpop.f32.mrf.mxu2 }
 0x3b8   : > { %v858_v59 = vpop.f32.mrf.mxu3 }
 0x3b9   : > { %v2135_v61 = vpop.permute.xlu2 %433 }
 0x3ba   : > { %v2139_v63 = vadd.f32 %v2135_v61, %v1902_v25  ;;  %v445_v51 = vadd.f32 %v1907_v28, %v2135_v61 }
 0x3bc   : > { %v567_v1 = vadd.f32 %v559_v40, %v445_v51  ;;  %v569_v62 = vadd.f32 %v554_v27, %v2139_v63  ;;  %v670_v2 = vadd.f32 %v2049_v32, %v2139_v63  ;;  %v771_v4 = vadd.f32 %v750_v46, %v2139_v63 }
 0x3bd   : > { %v872_v6 = vadd.f32 %v851_v48, %v2139_v63 }
 0x3be   : > { %v664_v10 = vadd.f32 %v2007_v31, %v567_v1  ;;  %v668_v11 = vadd.f32 %v2059_v20, %v569_v62  ;;  %v760_v13 = vpop.f32.mrf.mxu2  ;;  %v769_v25 = vadd.f32 %v755_v53, %v670_v2  ;;  %v870_v28 = vadd.f32 %v856_v47, %v771_v4 }
 0x3c0   : > { %v666_v14 = vmax.f32 %v664_v10, 0.0  ;;  %v765_v16 = vadd.f32 %v760_v13, %v668_v11  ;;  %v861_v9 = vpop.f32.mrf.mxu3  ;;  %v967_v38 = vadd.f32 %v2071_v60, %v870_v28  ;;  %v1333_v60 = vpop.permute.xlu1 %1332 }
 0x3c1   : > { %v866_v23 = vadd.f32 %v861_v9, %v769_v25  ;;  %v1603_v1 = vpack.c.bf16 %v2089_v15, %v1333_v60 }
 0x3c2   : > { %v767_v37 = vmax.f32 %v666_v14, %v765_v16 }
 0x3c4   : > { %v868_v27 = vmax.f32 %v767_v37, %v866_v23 }
 0x3c6   : > { %v762_v32 = vpop.f32.mrf.mxu2  ;;  %v969_v40 = vmax.f32 %v868_v27, %v967_v38 }
 0x3c9   : > { %v1238_v41 = vpop.permute.xlu0 %1237 }
 0x3ca   : > { %v1240_v43 = vsel %vm364_vm12, %v1238_v41, 0.0 }
 0x3cb   : > { %v1242_v44 = vpack.c.bf16 %v1240_v43, %v1240_v43 }
 0x3cd   : > { %v1244_v31 = vsel %vm399_vm13, %v1242_v44, 0 }
 0x3ce   : > { %v2153_v20 = vpop.f32.mrf.mxu2  ;;  %1252 = vmatpush.bf16.msra.mxu3 %v1244_v31 }
 0x3d1   : > { %v1337_v46 = vpop.permute.xlu0 %1336 }
 0x3d2   : > { %v1339_v48 = vsel %vm364_vm12, %v1337_v46, 0.0  ;;  %1592 = vmatpush.bf16.msk.msra.mxu3 %vm1763_vm2, %v1591_v45 }
 0x3d3   : > { %v1341_v53 = vpack.c.bf16 %v1339_v48, %v1339_v48 }
 0x3d5   : > { %v1343_v47 = vsel %vm399_vm13, %v1341_v53, 0  ;;  %1593 = vmatmul.msk.bf16.vlgmr.msra.gmra.mxu3 %vm389_vm5, %v1969_v7 }
 0x3d6   : > { %v2161_v51 = vpop.f32.mrf.mxu2  ;;  %1351 = vmatpush.bf16.msra.mxu0 %v1343_v47 }
 0x3d9   : > { %v2164_v62 = vpop.permute.xlu0 %438 }
 0x3da   : > { %v2168_v39 = vadd.f32 %v2164_v62, %v1905_v26  ;;  %v446_v33 = vadd.f32 %v1909_v29, %v2164_v62  ;;  %1604 = vmatpush.bf16.msk.msra.mxu0 %vm1763_vm2, %v1603_v1 }
 0x3dc   : > { %v568_v2 = vadd.f32 %v561_v42, %v446_v33  ;;  %v570_v4 = vadd.f32 %v2118_v36, %v2168_v39  ;;  %v671_v10 = vadd.f32 %v2053_v54, %v2168_v39  ;;  %v772_v15 = vadd.f32 %v752_v52, %v2168_v39  ;;  %v863_v42 = vpop.f32.mrf.mxu3 }
 0x3dd   : > { %1605 = vmatmul.msk.bf16.vlgmr.msra.gmra.mxu0 %vm389_vm5, %v1969_v7  ;;  %v873_v26 = vadd.f32 %v853_v34, %v2168_v39 }
 0x3de   : > { %v665_v11 = vadd.f32 %v2011_v35, %v568_v2  ;;  %v1058_v29 = vpop.f32.mrf.mxu2  ;;  %v669_v5 = vadd.f32 %v2061_v22, %v570_v4  ;;  %v770_v13 = vadd.f32 %v757_v49, %v671_v10  ;;  %v871_v36 = vadd.f32 %v858_v59, %v772_v15 }
 0x3df   : > { %v973_v35 = vadd.f32 %v2063_v55, %v2139_v63  ;;  %v971_v22 = vadd.f32 %v2067_v57, %v872_v6  ;;  %v972_v55 = vadd.f32 %v2069_v58, %v873_v26  ;;  %v1074_v58 = vadd.f32 %v2153_v20, %v2139_v63 }
 0x3e0   : > { %v667_v25 = vmax.f32 %v665_v11, 0.0  ;;  %v766_v14 = vadd.f32 %v762_v32, %v669_v5  ;;  %v867_v9 = vadd.f32 %v863_v42, %v770_v13  ;;  %v968_v28 = vadd.f32 %v2076_v8, %v871_v36 }
 0x3e1   : > { %v1072_v34 = vadd.f32 %v1058_v29, %v973_v35  ;;  %v974_v8 = vadd.f32 %v2065_v56, %v2168_v39  ;;  %v1173_v48 = vadd.f32 %v2104_v0, %v1074_v58  ;;  %v1075_v10 = vadd.f32 %v2161_v51, %v2168_v39 }
 0x3e2   : > { %v768_v16 = vmax.f32 %v667_v25, %v766_v14 }
 0x3e3   : > { %v1169_v23 = vadd.f32 %v2112_v24, %v1072_v34  ;;  %v1174_v0 = vadd.f32 %v2108_v12, %v1075_v10 }
 0x3e4   : > { %v869_v54 = vmax.f32 %v768_v16, %v867_v9 }
 0x3e5   : > { %1594 = vmatmul.msk.bf16.gmra.mxu3 %vm389_vm5, %v1978_v50 }
 0x3e6   : > { %v1060_v7 = vpop.f32.mrf.mxu2  ;;  %v970_v52 = vmax.f32 %v869_v54, %v968_v28 }
 0x3e7   : > { %v1073_v38 = vadd.f32 %v1060_v7, %v974_v8 }
 0x3ed   : > { %1606 = vmatmul.msk.bf16.gmra.mxu0 %vm389_vm5, %v1978_v50  ;;  %v1170_v50 = vadd.f32 %v2116_v30, %v1073_v38  ;;  %v1175_v30 = vadd.f32 %v2096_v17, %v2139_v63  ;;  %v1176_v17 = vadd.f32 %v2100_v18, %v2168_v39  ;;  %v448_v63 = vadd.f32 %v2164_v62, %v1899_v21 }
 0x3ee   : > { %v1063_v49 = vpop.f32.mrf.mxu2 }
 0x3ef   : > { %v1068_v59 = vadd.f32 %v1063_v49, %v971_v22 }
 0x3f1   : > { %v1070_v37 = vmax.f32 %v969_v40, %v1068_v59 }
 0x3f3   : > { %v1171_v27 = vmax.f32 %v1070_v37, %v1169_v23 }
 0x3f5   : > { %1595 = vmatmul.msk.bf16.gmra.mxu3 %vm389_vm5, %v1948_v3 }
 0x3f6   : > { %v1065_v32 = vpop.f32.mrf.mxu2 }
 0x3f7   : > { %v1069_v41 = vadd.f32 %v1065_v32, %v972_v55 }
 0x3f9   : > { %v1071_v57 = vmax.f32 %v970_v52, %v1069_v41 }
 0x3fb   : > { %v1172_v6 = vmax.f32 %v1071_v57, %v1170_v50 }
 0x3fd   : > { %1607 = vmatmul.msk.bf16.gmra.mxu0 %vm389_vm5, %v1948_v3  ;;  %v447_v3 = vadd.f32 %v2135_v61, %v1897_v19 }
 0x458   : > { %v1255_v24 = vpop.f32.mrf.mxu3 }
 0x459   : > { %v1276_v33 = vadd.f32 %v1255_v24, %v447_v3 }
 0x45a   : > { %v1354_v40 = vpop.f32.mrf.mxu0 }
 0x460   : > { %v1257_v43 = vpop.f32.mrf.mxu3 }
 0x461   : > { %v1277_v29 = vadd.f32 %v1257_v43, %v448_v63 }
 0x462   : > { %v1355_v56 = vpop.f32.mrf.mxu0 }
 0x468   : > { %v1260_v44 = vpop.f32.mrf.mxu3 }
 0x469   : > { %v1274_v60 = vadd.f32 %v1260_v44, %v1175_v30 }
 0x46a   : > { %v1357_v31 = vpop.f32.mrf.mxu0 }
 0x46b   : > { %v1371_v15 = vadd.f32 %v1357_v31, %v1276_v33 }
 0x470   : > { %v1262_v45 = vpop.f32.mrf.mxu3 }
 0x471   : > { %v1275_v26 = vadd.f32 %v1262_v45, %v1176_v17 }
 0x472   : > { %v1359_v46 = vpop.f32.mrf.mxu0 }
 0x473   : > { %v1372_v42 = vadd.f32 %v1359_v46, %v1277_v29 }
 0x478   : > { %v1265_v53 = vpop.f32.mrf.mxu3 }
 0x479   : > { %v1270_v47 = vadd.f32 %v1265_v53, %v1173_v48 }
 0x47a   : > { %v1362_v1 = vpop.f32.mrf.mxu0 }
 0x47b   : > { %v1272_v2 = vmax.f32 %v1171_v27, %v1270_v47  ;;  %v1367_v4 = vadd.f32 %v1362_v1, %v1274_v60 }
 0x47d   : > { %v1369_v20 = vmax.f32 %v1272_v2, %v1367_v4 }
 0x47f   : > { %v1373_v19 = vmax.f32 %v1369_v20, %v1371_v15 }
 0x480   : > { %v1267_v61 = vpop.f32.mrf.mxu3 }
 0x481   : > { %1375 = vst.msk [vmem:[%s285_s9] sm:$0xff] %vm300_vm0, %v1373_v19  ;;  %v1271_v51 = vadd.f32 %v1267_v61, %v1174_v0 }
 0x482   : > { %v1364_v11 = vpop.f32.mrf.mxu0 }
 0x483   : > { %v1273_v5 = vmax.f32 %v1172_v6, %v1271_v51  ;;  %v1368_v13 = vadd.f32 %v1364_v11, %v1275_v26 }
 0x485   : > { %v1370_v25 = vmax.f32 %v1273_v5, %v1368_v13 }
 0x487   : > { %v1374_v14 = vmax.f32 %v1370_v25, %v1372_v42 }
 0x489   : > { %1376 = vst.msk [vmem:[%s285_s9 + $0x8] sm:$0xff] %vm300_vm0, %v1374_v14 }
 0x48a PF: > { %s16_s21 = sadd.s32 1, %s1646_s21  }
 0x48b   : > { %p13_p4 = scmp.ge.s32.totalorder %s16_s21, 4  }
 0x48d   :  { %15 = sbr.rel (!%p13_p4) target bundleno = 1 (0x1), region = 80 }

</bundles_post_ra>
